<compile_context>
chip_gen: v7x
topology: tpu7x:2x2x1
jax: 0.10.0
libtpu: 0.0.40
codegen_flags: <defaults>
</compile_context>

<pallas_src>
import functools

import jax
import jax.numpy as jnp
from jax import lax
from jax.experimental import pallas as pl
from jax.experimental.pallas import tpu as pltpu

# ---- static block hyper-parameters (DilatedConv1d(dim=8, k=3, dilation=2)) ----
DIM = 8                              # channels
SEQ = 16                             # sequence length (DIM * SEQ == 128 lanes)
K = 3
DIL = 2
PAD = ((K - 1) // 2) * DIL           # 2
EXPAN = 4                            # module hard-codes self.expan_ratio = 4
HID = DIM * EXPAN                    # 32
EPS = 1e-5                           # BatchNorm1d default eps
NEG_SLOPE = 0.1                      # LeakyReLU slope
LS_INIT = 1e-6                       # layer_scale_init_value

# rows of the packed (16, 128) constants operand (review item 5)
R_MASK = 0          # rows 0..7 : 0/1 channel mask  (C, F)
R_TAP_M = 8         # depthwise tap multiplying x[l - PAD] (halo-masked)
R_TAP_0 = 9         # depthwise tap multiplying x[l]
R_TAP_P = 10        # depthwise tap multiplying x[l + PAD] (halo-masked)
R_GAMMA = 11        # BN gamma per lane
R_BETA = 12         # BN beta per lane
R_B2 = 13           # pwconv2 bias per lane
R_LS = 14           # layer scale per lane
N_CONST_ROWS = 16


def cdc_block_kernel(x_ref, consts_ref, w1_ref, b1_ref, w2_ref, o_ref,
                     sum_ref, sumsq_ref, *, inv_bl):
    phase = pl.program_id(0)          # 0: accumulate BN batch stats, 1: apply
    tile = pl.program_id(1)           # activation row tile

    # ---- depthwise dilated conv: two XLU lane-rolls, taps stay in vregs.
    # Zero-padding halo masks are folded into tap rows R_TAP_M / R_TAP_P, so the
    # cross-channel wrap lanes are multiplied by exactly 0.0 (VPU/XLU only).
    x = x_ref[...]                                     # (TB, F) f32
    x_m = pltpu.roll(x, PAD, 1)                        # x[..., l - PAD] at lane l
    x_p = pltpu.roll(x, x.shape[1] - PAD, 1)           # x[..., l + PAD] at lane l
    acc = (consts_ref[R_TAP_M:R_TAP_M + 1, :] * x_m
           + consts_ref[R_TAP_0:R_TAP_0 + 1, :] * x
           + consts_ref[R_TAP_P:R_TAP_P + 1, :] * x_p)

    # ---- phase 0: accumulate per-lane sum / sum-of-squares in f32 (VPU-exact).
    @pl.when(jnp.logical_and(phase == 0, tile == 0))
    def _():
        sum_ref[...] = jnp.zeros_like(sum_ref)
        sumsq_ref[...] = jnp.zeros_like(sumsq_ref)

    @pl.when(phase == 0)
    def _():
        sum_ref[...] += jnp.sum(acc, axis=0, keepdims=True)
        sumsq_ref[...] += jnp.sum(acc * acc, axis=0, keepdims=True)

    # ---- phase 1: finalize BN stats, pointwise convs, layer scale, residual.
    @pl.when(phase == 1)
    def _():
        mask = consts_ref[R_MASK:R_MASK + DIM, :]      # (C, F) 0/1 channel mask
        contract_lanes = (((1,), (1,)), ((), ()))
        # channel reduce (contract the lane axis against the 0/1 mask) ...
        csum = lax.dot_general(sum_ref[...], mask, contract_lanes,
                               preferred_element_type=jnp.float32)   # (1, C)
        csq = lax.dot_general(sumsq_ref[...], mask, contract_lanes,
                              preferred_element_type=jnp.float32)    # (1, C)
        # ... then broadcast back per lane; 1/(B*L) applied as an exact VPU scalar.
        mean = jnp.dot(csum, mask, preferred_element_type=jnp.float32) * inv_bl
        ex2 = jnp.dot(csq, mask, preferred_element_type=jnp.float32) * inv_bl
        # TODO(synk): E[x^2] - mean^2 cancels badly when |mean| >> std (gravity DC
        # offsets on real IMU accel channels); switch to a shifted / two-pass
        # variance if this kernel is fed raw sensor data.
        var = ex2 - mean * mean                        # biased batch variance
        scale = consts_ref[R_GAMMA:R_GAMMA + 1, :] * lax.rsqrt(var + EPS)
        shift = consts_ref[R_BETA:R_BETA + 1, :] - mean * scale
        xn = acc * scale + shift                       # the single BN FMA pass

        # pwconv1 (1x1) + LeakyReLU(0.1) + pwconv2 (1x1): bf16 MXU, f32 accumulate.
        h = jnp.dot(xn.astype(jnp.bfloat16), w1_ref[...],
                    preferred_element_type=jnp.float32) + b1_ref[...]
        h = jnp.where(h >= 0, h, NEG_SLOPE * h)
        y = (jnp.dot(h.astype(jnp.bfloat16), w2_ref[...],
                     preferred_element_type=jnp.float32)
             + consts_ref[R_B2:R_B2 + 1, :])

        # layer scale + residual; full 128-lane unmasked store.
        o_ref[...] = x + consts_ref[R_LS:R_LS + 1, :] * y


def pack_params(dw_oik, bn_gamma, bn_beta, w1_oc, b1, w2_oc, b2, ls):
    """Pack PyTorch-layout parameters into lane-dense kernel operands.

    Parameter-only, activation-independent work (done once per weight update in a
    real pipeline).  Returns:
      consts : (16, F)  f32  channel mask + dw taps + BN affine + b2 + layer scale
      w1_big : (F, 4F)  bf16 block-diagonal pwconv1
      b1f    : (1, 4F)  f32  pwconv1 bias
      w2_big : (4F, F)  bf16 block-diagonal pwconv2
    """
    C = dw_oik.shape[0]
    L = SEQ
    F = C * L
    lane = jnp.arange(F)
    lpos = lane % L
    chan = lane // L

    # rows 0..7: 0/1 channel mask (entries exactly representable in bf16, so the
    # BN-stats matmuls keep exact weights even if f32 is lowered to bf16 passes).
    mask = (chan[None, :] == jnp.arange(C)[:, None]).astype(jnp.float32)   # (C, F)

    # depthwise taps flattened to (K, F); zero-padding halo folded into taps 0, 2.
    taps = jnp.repeat(jnp.transpose(dw_oik[:, 0, :]), L, axis=1)           # (K, F)
    tap_m = jnp.where(lpos >= PAD, taps[0], 0.0)                           # x[l-PAD]
    tap_0 = taps[1]
    tap_p = jnp.where(lpos < L - PAD, taps[2], 0.0)                        # x[l+PAD]

    gf = jnp.repeat(bn_gamma, L)
    btf = jnp.repeat(bn_beta, L)
    b2f = jnp.repeat(b2, L)
    lsf = jnp.repeat(ls, L)
    pad_row = jnp.zeros((F,), jnp.float32)
    consts = jnp.concatenate(
        [mask,
         jnp.stack([tap_m, tap_0, tap_p, gf, btf, b2f, lsf, pad_row], axis=0)],
        axis=0).astype(jnp.float32)                                        # (16, F)

    # block-diagonal pointwise-conv weights, stored bf16 (f32 accumulate in-kernel)
    eye_l = jnp.eye(L, dtype=jnp.float32)
    w1_big = jnp.einsum('hc,lm->clhm', w1_oc, eye_l).reshape(F, HID * L)
    w2_big = jnp.einsum('ch,lm->hlcm', w2_oc, eye_l).reshape(HID * L, F)
    b1f = jnp.repeat(b1, L).reshape(1, HID * L)
    return consts, w1_big.astype(jnp.bfloat16), b1f, w2_big.astype(jnp.bfloat16)


def dilated_conv1d_pallas(x_ncl, packed, *, row_tile=128):
    """x_ncl: (B, C, L) float32, PyTorch NCL layout. Returns (B, C, L)."""
    B, C, L = x_ncl.shape
    F = C * L
    consts, w1_big, b1f, w2_big = packed
    hidf = w1_big.shape[1]
    x_flat = x_ncl.reshape(B, F)          # free view: collapses contiguous minors

    tb = row_tile if (B >= row_tile and B % row_tile == 0) else B
    nt = B // tb
    inv_bl = 1.0 / float(B * L)           # 1/4096 here -> exactly representable

    kernel = functools.partial(cdc_block_kernel, inv_bl=inv_bl)

    # VMEM budget (f32 act tiles + bf16 weights) is ~0.8 MiB — far under the
    # 16 MiB (v5e) / 32 MiB (v6e, v7x) default scoped limits; raise
    # vmem_limit_bytes only if dim / row_tile grow substantially.
    grid_spec = pltpu.PrefetchScalarGridSpec(
        num_scalar_prefetch=0,
        grid=(2, nt),                      # (phase, row tile); tile varies fastest
        in_specs=[
            pl.BlockSpec((tb, F), lambda p, i: (i, 0)),              # streamed rows
            pl.BlockSpec((N_CONST_ROWS, F), lambda p, i: (0, 0)),    # resident
            pl.BlockSpec((F, hidf), lambda p, i: (0, 0)),            # resident
            pl.BlockSpec((1, hidf), lambda p, i: (0, 0)),            # resident
            pl.BlockSpec((hidf, F), lambda p, i: (0, 0)),            # resident
        ],
        # i * p: block 0 for all of phase 0 and the first phase-1 step, then block
        # i — each output block's visits are contiguous and it is written exactly
        # once, on its last visit (no stale flushes, no double HBM writes).
        out_specs=pl.BlockSpec((tb, F), lambda p, i: (i * p, 0)),
        scratch_shapes=[pltpu.VMEM((1, F), jnp.float32),   # per-lane sum
                        pltpu.VMEM((1, F), jnp.float32)],  # per-lane sum of squares
    )
    out_flat = pl.pallas_call(
        kernel,
        out_shape=jax.ShapeDtypeStruct((B, F), jnp.float32),
        grid_spec=grid_spec,
        compiler_params=pltpu.CompilerParams(
            dimension_semantics=("arbitrary", "arbitrary")),
    )(x_flat, consts, w1_big, b1f, w2_big)
    return out_flat.reshape(B, C, L)


def dilated_conv1d_ref(x_ncl, dw_oik, bng, bnb, w1_oc, b1, w2_oc, b2, ls):
    """Pure-JAX reference mirroring the PyTorch forward (HIGHEST precision)."""
    hp = lax.Precision.HIGHEST
    C = x_ncl.shape[1]
    y = lax.conv_general_dilated(
        x_ncl, dw_oik, window_strides=(1,), padding=[(PAD, PAD)],
        rhs_dilation=(DIL,), dimension_numbers=('NCH', 'OIH', 'NCH'),
        feature_group_count=C, precision=hp)
    mean = y.mean(axis=(0, 2), keepdims=True)
    var = ((y - mean) ** 2).mean(axis=(0, 2), keepdims=True)
    yn = (y - mean) / jnp.sqrt(var + EPS)
    yn = yn * bng[None, :, None] + bnb[None, :, None]
    h = jnp.einsum('ncl,hc->nhl', yn, w1_oc, precision=hp) + b1[None, :, None]
    h = jnp.where(h >= 0, h, NEG_SLOPE * h)
    z = jnp.einsum('nhl,ch->ncl', h, w2_oc, precision=hp) + b2[None, :, None]
    return x_ncl + z * ls[None, :, None]


if __name__ == "__main__":
    # 256 IMU windows of (8, 16): fills the MXU M dimension (review item 1) while
    # the whole activation set is still only ~128 KiB.
    B, C, L = 256, DIM, SEQ
    key = jax.random.PRNGKey(0)
    ks = jax.random.split(key, 9)

    # deterministic synthetic parameters (PyTorch weight layouts)
    dw_oik = 0.3 * jax.random.normal(ks[0], (C, 1, K), jnp.float32)   # depthwise (C,1,K)
    w1_oc = 0.2 * jax.random.normal(ks[1], (HID, C), jnp.float32)     # pwconv1 (out,in)
    b1 = 0.1 * jax.random.normal(ks[2], (HID,), jnp.float32)
    w2_oc = 0.2 * jax.random.normal(ks[3], (C, HID), jnp.float32)     # pwconv2 (out,in)
    b2 = 0.1 * jax.random.normal(ks[4], (C,), jnp.float32)
    bng = 1.0 + 0.1 * jax.random.normal(ks[5], (C,), jnp.float32)     # BN gamma
    bnb = 0.1 * jax.random.normal(ks[6], (C,), jnp.float32)           # BN beta
    x = jax.random.normal(ks[7], (B, C, L), jnp.float32)

    def run(ls):
        packed = pack_params(dw_oik, bng, bnb, w1_oc, b1, w2_oc, b2, ls)
        return jax.block_until_ready(dilated_conv1d_pallas(x, packed))

    # (1) module-init layer scale (1e-6): tight check (residual path must be exact).
    ls_init = LS_INIT * jnp.ones((C,), jnp.float32)
    out = run(ls_init)
    ref = dilated_conv1d_ref(x, dw_oik, bng, bnb, w1_oc, b1, w2_oc, b2, ls_init)
    assert out.shape == (B, C, L)
    assert jnp.allclose(out, ref, rtol=1e-5, atol=1e-5), "mismatch vs reference (ls=1e-6)"

    # (2) larger layer scale so the CDC branch meaningfully affects the output;
    #     the looser tolerance absorbs the bf16 pointwise-conv weights while still
    #     catching any structural error in the conv / BN-stats / pointwise math.
    ls_big = 0.05 * (1.0 + 0.3 * jax.random.normal(ks[8], (C,), jnp.float32))
    out2 = run(ls_big)
    ref2 = dilated_conv1d_ref(x, dw_oik, bng, bnb, w1_oc, b1, w2_oc, b2, ls_big)
    assert jnp.allclose(out2, ref2, rtol=5e-3, atol=5e-3), "mismatch vs reference (ls=0.05)"

    print("KERNEL_OK")
</pallas_src>

<mosaic_0001>
module attributes {stable_mosaic.version = 11 : i64} {
  func.func @cdc_block_kernel(%arg0: i32, %arg1: i32, %arg2: memref<128x128xf32, #tpu.memory_space<vmem>>, %arg3: memref<16x128xf32, #tpu.memory_space<vmem>>, %arg4: memref<128x512xbf16, #tpu.memory_space<vmem>>, %arg5: memref<1x512xf32, #tpu.memory_space<vmem>>, %arg6: memref<512x128xbf16, #tpu.memory_space<vmem>>, %arg7: memref<128x128xf32, #tpu.memory_space<vmem>>, %arg8: memref<1x128xf32, #tpu.memory_space<vmem>>, %arg9: memref<1x128xf32, #tpu.memory_space<vmem>>) attributes {dimension_semantics = [#tpu.dimension_semantics<arbitrary>, #tpu.dimension_semantics<arbitrary>], iteration_bounds = array<i64: 2, 2>, scalar_prefetch = 0 : i64, scratch_operands = 2 : i64, tpu.core_type = #tpu.core_type<tc>, window_params = [{transform_indices = @transform_0, window_bounds = array<i64: 128, 128>}, {pipeline_mode = #tpu.pipeline_mode<synchronous>, transform_indices = @transform_1, window_bounds = array<i64: 16, 128>}, {pipeline_mode = #tpu.pipeline_mode<synchronous>, transform_indices = @transform_2, window_bounds = array<i64: 128, 512>}, {pipeline_mode = #tpu.pipeline_mode<synchronous>, transform_indices = @transform_3, window_bounds = array<i64: 1, 512>}, {pipeline_mode = #tpu.pipeline_mode<synchronous>, transform_indices = @transform_4, window_bounds = array<i64: 512, 128>}, {transform_indices = @transform_5, window_bounds = array<i64: 128, 128>}]} {
    %c0 = arith.constant 0 : index
    %c0_0 = arith.constant 0 : index
    %0 = vector.load %arg2[%c0, %c0_0] : memref<128x128xf32, #tpu.memory_space<vmem>>, vector<128x128xf32>
    %c2_i32 = arith.constant 2 : i32
    %1 = tpu.dynamic_rotate %0 by %c2_i32 dim 1 : vector<128x128xf32>, i32 -> vector<128x128xf32>
    %c126_i32 = arith.constant 126 : i32
    %2 = tpu.dynamic_rotate %0 by %c126_i32 dim 1 : vector<128x128xf32>, i32 -> vector<128x128xf32>
    %c8 = arith.constant 8 : index
    %c0_1 = arith.constant 0 : index
    %3 = vector.load %arg3[%c8, %c0_1] : memref<16x128xf32, #tpu.memory_space<vmem>>, vector<1x128xf32>
    %4 = vector.broadcast %3 : vector<1x128xf32> to vector<128x128xf32>
    %5 = arith.mulf %4, %1 : vector<128x128xf32>
    %c9 = arith.constant 9 : index
    %c0_2 = arith.constant 0 : index
    %6 = vector.load %arg3[%c9, %c0_2] : memref<16x128xf32, #tpu.memory_space<vmem>>, vector<1x128xf32>
    %7 = vector.broadcast %6 : vector<1x128xf32> to vector<128x128xf32>
    %8 = arith.mulf %7, %0 : vector<128x128xf32>
    %9 = arith.addf %5, %8 : vector<128x128xf32>
    %c10 = arith.constant 10 : index
    %c0_3 = arith.constant 0 : index
    %10 = vector.load %arg3[%c10, %c0_3] : memref<16x128xf32, #tpu.memory_space<vmem>>, vector<1x128xf32>
    %11 = vector.broadcast %10 : vector<1x128xf32> to vector<128x128xf32>
    %12 = arith.mulf %11, %2 : vector<128x128xf32>
    %13 = arith.addf %9, %12 : vector<128x128xf32>
    %c0_i32 = arith.constant 0 : i32
    %14 = arith.cmpi eq, %arg0, %c0_i32 : i32
    %c0_i32_4 = arith.constant 0 : i32
    %15 = arith.cmpi eq, %arg1, %c0_i32_4 : i32
    %16 = arith.andi %14, %15 : i1
    %17 = arith.extui %16 : i1 to i32
    %c0_i32_5 = arith.constant 0 : i32
    %18 = arith.cmpi ne, %17, %c0_i32_5 : i32
    scf.if %18 {
      %cst = arith.constant 0.000000e+00 : f32
      %25 = vector.broadcast %cst : f32 to vector<1x128xf32>
      %c0_9 = arith.constant 0 : index
      %c0_10 = arith.constant 0 : index
      %26 = vector.load %arg8[%c0_9, %c0_10] : memref<1x128xf32, #tpu.memory_space<vmem>>, vector<1x128xf32>
      tpu.vector_store %arg8[%c0_9, %c0_10], %25 {strides = array<i32>} : memref<1x128xf32, #tpu.memory_space<vmem>>, vector<1x128xf32>,
      %cst_11 = arith.constant 0.000000e+00 : f32
      %27 = vector.broadcast %cst_11 : f32 to vector<1x128xf32>
      %c0_12 = arith.constant 0 : index
      %c0_13 = arith.constant 0 : index
      %28 = vector.load %arg9[%c0_12, %c0_13] : memref<1x128xf32, #tpu.memory_space<vmem>>, vector<1x128xf32>
      tpu.vector_store %arg9[%c0_12, %c0_13], %27 {strides = array<i32>} : memref<1x128xf32, #tpu.memory_space<vmem>>, vector<1x128xf32>,
    } else {
    }
    %c0_i32_6 = arith.constant 0 : i32
    %19 = arith.cmpi eq, %arg0, %c0_i32_6 : i32
    %20 = arith.extui %19 : i1 to i32
    %c0_i32_7 = arith.constant 0 : i32
    %21 = arith.cmpi ne, %20, %c0_i32_7 : i32
    scf.if %21 {
      %c0_9 = arith.constant 0 : index
      %c0_10 = arith.constant 0 : index
      %25 = vector.load %arg8[%c0_9, %c0_10] : memref<1x128xf32, #tpu.memory_space<vmem>>, vector<1x128xf32>
      %cst = arith.constant dense<0.000000e+00> : vector<128xf32>
      %26 = vector.multi_reduction <add>, %13, %cst [0] : vector<128x128xf32> to vector<128xf32>
      %27 = vector.shape_cast %26 : vector<128xf32> to vector<1x128xf32>
      %28 = arith.addf %25, %27 : vector<1x128xf32>
      %c0_11 = arith.constant 0 : index
      %c0_12 = arith.constant 0 : index
      %29 = vector.load %arg8[%c0_11, %c0_12] : memref<1x128xf32, #tpu.memory_space<vmem>>, vector<1x128xf32>
      tpu.vector_store %arg8[%c0_11, %c0_12], %28 {strides = array<i32>} : memref<1x128xf32, #tpu.memory_space<vmem>>, vector<1x128xf32>,
      %c0_13 = arith.constant 0 : index
      %c0_14 = arith.constant 0 : index
      %30 = vector.load %arg9[%c0_13, %c0_14] : memref<1x128xf32, #tpu.memory_space<vmem>>, vector<1x128xf32>
      %31 = arith.mulf %13, %13 : vector<128x128xf32>
      %cst_15 = arith.constant dense<0.000000e+00> : vector<128xf32>
      %32 = vector.multi_reduction <add>, %31, %cst_15 [0] : vector<128x128xf32> to vector<128xf32>
      %33 = vector.shape_cast %32 : vector<128xf32> to vector<1x128xf32>
      %34 = arith.addf %30, %33 : vector<1x128xf32>
      %c0_16 = arith.constant 0 : index
      %c0_17 = arith.constant 0 : index
      %35 = vector.load %arg9[%c0_16, %c0_17] : memref<1x128xf32, #tpu.memory_space<vmem>>, vector<1x128xf32>
      tpu.vector_store %arg9[%c0_16, %c0_17], %34 {strides = array<i32>} : memref<1x128xf32, #tpu.memory_space<vmem>>, vector<1x128xf32>,
    } else {
    }
    %c1_i32 = arith.constant 1 : i32
    %22 = arith.cmpi eq, %arg0, %c1_i32 : i32
    %23 = arith.extui %22 : i1 to i32
    %c0_i32_8 = arith.constant 0 : i32
    %24 = arith.cmpi ne, %23, %c0_i32_8 : i32
    scf.if %24 {
      %c0_9 = arith.constant 0 : index
      %c0_10 = arith.constant 0 : index
      %25 = vector.load %arg3[%c0_9, %c0_10] : memref<16x128xf32, #tpu.memory_space<vmem>>, vector<8x128xf32>
      %c0_11 = arith.constant 0 : index
      %c0_12 = arith.constant 0 : index
      %26 = vector.load %arg8[%c0_11, %c0_12] : memref<1x128xf32, #tpu.memory_space<vmem>>, vector<1x128xf32>
      %cst = arith.constant dense<0.000000e+00> : vector<1x8xf32>
      %27 = tpu.matmul %26, %25, %cst {dimension_numbers = #tpu.dot_dimension_numbers<[1], [1], [0], [0], [0, 0, 1, 0], [], []>} : vector<1x128xf32>, vector<8x128xf32>, vector<1x8xf32> -> vector<1x8xf32>
      %c0_13 = arith.constant 0 : index
      %c0_14 = arith.constant 0 : index
      %28 = vector.load %arg9[%c0_13, %c0_14] : memref<1x128xf32, #tpu.memory_space<vmem>>, vector<1x128xf32>
      %cst_15 = arith.constant dense<0.000000e+00> : vector<1x8xf32>
      %29 = tpu.matmul %28, %25, %cst_15 {dimension_numbers = #tpu.dot_dimension_numbers<[1], [1], [0], [0], [0, 0, 1, 0], [], []>} : vector<1x128xf32>, vector<8x128xf32>, vector<1x8xf32> -> vector<1x8xf32>
      %cst_16 = arith.constant dense<0.000000e+00> : vector<1x128xf32>
      %30 = tpu.matmul %27, %25, %cst_16 {dimension_numbers = #tpu.dot_dimension_numbers<[1], [0], [0], [1], [0, 0, 1, 1], [], []>} : vector<1x8xf32>, vector<8x128xf32>, vector<1x128xf32> -> vector<1x128xf32>
      %cst_17 = arith.constant 2.44140625E-4 : f32
      %31 = vector.broadcast %cst_17 : f32 to vector<1x128xf32>
      %32 = arith.mulf %30, %31 : vector<1x128xf32>
      %cst_18 = arith.constant dense<0.000000e+00> : vector<1x128xf32>
      %33 = tpu.matmul %29, %25, %cst_18 {dimension_numbers = #tpu.dot_dimension_numbers<[1], [0], [0], [1], [0, 0, 1, 1], [], []>} : vector<1x8xf32>, vector<8x128xf32>, vector<1x128xf32> -> vector<1x128xf32>
      %cst_19 = arith.constant 2.44140625E-4 : f32
      %34 = vector.broadcast %cst_19 : f32 to vector<1x128xf32>
      %35 = arith.mulf %33, %34 : vector<1x128xf32>
      %36 = arith.mulf %32, %32 : vector<1x128xf32>
      %37 = arith.subf %35, %36 : vector<1x128xf32>
      %c11 = arith.constant 11 : index
      %c0_20 = arith.constant 0 : index
      %38 = vector.load %arg3[%c11, %c0_20] : memref<16x128xf32, #tpu.memory_space<vmem>>, vector<1x128xf32>
      %cst_21 = arith.constant 9.99999974E-6 : f32
      %39 = vector.broadcast %cst_21 : f32 to vector<1x128xf32>
      %40 = arith.addf %37, %39 : vector<1x128xf32>
      %41 = math.rsqrt %40 : vector<1x128xf32>
      %42 = arith.mulf %38, %41 : vector<1x128xf32>
      %c12 = arith.constant 12 : index
      %c0_22 = arith.constant 0 : index
      %43 = vector.load %arg3[%c12, %c0_22] : memref<16x128xf32, #tpu.memory_space<vmem>>, vector<1x128xf32>
      %44 = arith.mulf %32, %42 : vector<1x128xf32>
      %45 = arith.subf %43, %44 : vector<1x128xf32>
      %46 = vector.broadcast %42 : vector<1x128xf32> to vector<128x128xf32>
      %47 = arith.mulf %13, %46 : vector<128x128xf32>
      %48 = vector.broadcast %45 : vector<1x128xf32> to vector<128x128xf32>
      %49 = arith.addf %47, %48 : vector<128x128xf32>
      %50 = arith.truncf %49 : vector<128x128xf32> to vector<128x128xbf16>
      %c0_23 = arith.constant 0 : index
      %c0_24 = arith.constant 0 : index
      %51 = vector.load %arg4[%c0_23, %c0_24] : memref<128x512xbf16, #tpu.memory_space<vmem>>, vector<128x512xbf16>
      %cst_25 = arith.constant dense<0.000000e+00> : vector<128x512xf32>
      %52 = tpu.matmul %50, %51, %cst_25 {dimension_numbers = #tpu.dot_dimension_numbers<[1], [0], [0], [1], [0, 0, 1, 1], [], []>} : vector<128x128xbf16>, vector<128x512xbf16>, vector<128x512xf32> -> vector<128x512xf32>
      %c0_26 = arith.constant 0 : index
      %c0_27 = arith.constant 0 : index
      %53 = vector.load %arg5[%c0_26, %c0_27] : memref<1x512xf32, #tpu.memory_space<vmem>>, vector<1x512xf32>
      %54 = vector.broadcast %53 : vector<1x512xf32> to vector<128x512xf32>
      %55 = arith.addf %52, %54 : vector<128x512xf32>
      %cst_28 = arith.constant 0.000000e+00 : f32
      %56 = vector.broadcast %cst_28 : f32 to vector<128x512xf32>
      %57 = arith.cmpf oge, %55, %56 : vector<128x512xf32>
      %cst_29 = arith.constant 1.000000e-01 : f32
      %58 = vector.broadcast %cst_29 : f32 to vector<128x512xf32>
      %59 = arith.mulf %58, %55 : vector<128x512xf32>
      %60 = arith.select %57, %55, %59 : vector<128x512xi1>, vector<128x512xf32>
      %61 = arith.truncf %60 : vector<128x512xf32> to vector<128x512xbf16>
      %c0_30 = arith.constant 0 : index
      %c0_31 = arith.constant 0 : index
      %62 = vector.load %arg6[%c0_30, %c0_31] : memref<512x128xbf16, #tpu.memory_space<vmem>>, vector<512x128xbf16>
      %cst_32 = arith.constant dense<0.000000e+00> : vector<128x128xf32>
      %63 = tpu.matmul %61, %62, %cst_32 {dimension_numbers = #tpu.dot_dimension_numbers<[1], [0], [0], [1], [0, 0, 1, 1], [], []>} : vector<128x512xbf16>, vector<512x128xbf16>, vector<128x128xf32> -> vector<128x128xf32>
      %c13 = arith.constant 13 : index
      %c0_33 = arith.constant 0 : index
      %64 = vector.load %arg3[%c13, %c0_33] : memref<16x128xf32, #tpu.memory_space<vmem>>, vector<1x128xf32>
      %65 = vector.broadcast %64 : vector<1x128xf32> to vector<128x128xf32>
      %66 = arith.addf %63, %65 : vector<128x128xf32>
      %c14 = arith.constant 14 : index
      %c0_34 = arith.constant 0 : index
      %67 = vector.load %arg3[%c14, %c0_34] : memref<16x128xf32, #tpu.memory_space<vmem>>, vector<1x128xf32>
      %68 = vector.broadcast %67 : vector<1x128xf32> to vector<128x128xf32>
      %69 = arith.mulf %68, %66 : vector<128x128xf32>
      %70 = arith.addf %0, %69 : vector<128x128xf32>
      %c0_35 = arith.constant 0 : index
      %c0_36 = arith.constant 0 : index
      %71 = vector.load %arg7[%c0_35, %c0_36] : memref<128x128xf32, #tpu.memory_space<vmem>>, vector<128x128xf32>
      tpu.vector_store %arg7[%c0_35, %c0_36], %70 {strides = array<i32>} : memref<128x128xf32, #tpu.memory_space<vmem>>, vector<128x128xf32>,
    } else {
    }
    return
  }
  func.func @transform_0(%arg0: i32, %arg1: i32) -> (i32, i32) {
    %c0_i32 = arith.constant 0 : i32
    %c0_i32_0 = arith.constant 0 : i32
    return %arg1, %c0_i32 : i32, i32
  }
  func.func @transform_1(%arg0: i32, %arg1: i32) -> (i32, i32) {
    %c0_i32 = arith.constant 0 : i32
    %c0_i32_0 = arith.constant 0 : i32
    %c0_i32_1 = arith.constant 0 : i32
    return %c0_i32, %c0_i32_0 : i32, i32
  }
  func.func @transform_2(%arg0: i32, %arg1: i32) -> (i32, i32) {
    %c0_i32 = arith.constant 0 : i32
    %c0_i32_0 = arith.constant 0 : i32
    %c0_i32_1 = arith.constant 0 : i32
    return %c0_i32, %c0_i32_0 : i32, i32
  }
  func.func @transform_3(%arg0: i32, %arg1: i32) -> (i32, i32) {
    %c0_i32 = arith.constant 0 : i32
    %c0_i32_0 = arith.constant 0 : i32
    %c0_i32_1 = arith.constant 0 : i32
    return %c0_i32, %c0_i32_0 : i32, i32
  }
  func.func @transform_4(%arg0: i32, %arg1: i32) -> (i32, i32) {
    %c0_i32 = arith.constant 0 : i32
    %c0_i32_0 = arith.constant 0 : i32
    %c0_i32_1 = arith.constant 0 : i32
    return %c0_i32, %c0_i32_0 : i32, i32
  }
  func.func @transform_5(%arg0: i32, %arg1: i32) -> (i32, i32) {
    %0 = arith.muli %arg1, %arg0 : i32
    %c0_i32 = arith.constant 0 : i32
    %c0_i32_0 = arith.constant 0 : i32
    return %0, %c0_i32 : i32, i32
  }
}

</mosaic_0001>

<bundles_post_ra>
// kernel: tpu_custom_call.1
= control target key start
LH: loop header
LB: loop body
LE: loop exit
PB: predicated region body
PF: predicated region fallthrough
CT: control target
= control target key end

     0   :  { %s4011_s0 = inlined_call_operand.hbm [shape: f32[256,128], index: 0, kind: input, shape index: {}]   ;;  %s4012_s1 = inlined_call_operand.hbm [shape: f32[16,128], index: 1, kind: input, shape index: {}]   ;;  %s4013_s2 = inlined_call_operand.hbm [shape: bf16[128,512], index: 2, kind: input, shape index: {}]   ;;  %s4014_s3 = inlined_call_operand.vmem [shape: f32[1,512], index: 3, kind: input, shape index: {}]   ;;  %s4015_s4 = inlined_call_operand.hbm [shape: bf16[512,128], index: 4, kind: input, shape index: {}]   ;;  %s4016_s5 = inlined_call_operand.hbm [shape: f32[256,128], index: 5, kind: output, shape index: {}]  }
   0x1   :  { %4029 = sst [smem:[#allocation20_spill]] %s4012_s1 }
   0x2   :  { %4030 = sst [smem:[#allocation21_spill]] %s4013_s2 }
   0x3   :  { %4031 = sst [smem:[#allocation22_spill]] %s4014_s3 }
   0x4   :  { %4032 = sst [smem:[#allocation23_spill]] %s4015_s4 }
   0x5   :  { %4033 = sst [smem:[#allocation24_spill]] %s4016_s5 }
   0x6   :  { %10 = vsyncpa [#allocation5], 0 }
   0x7   :  { %12 = vsyncpa [#allocation5 + $0x1], 0 }
   0x8   :  { %13 = vsyncpa [#allocation8], 0 }
   0x9   :  { %14 = vsyncpa [#allocation11], 0 }
   0xa   :  { %15 = vsyncpa [#allocation6], 0 }
   0xb   :  { %17 = vsyncpa [#allocation6 + $0x1], 0  ;;  %s2984_s18 = smov 0   ;;  %s2986_s19 = smov 0  }
   0xc   :  { %s2988_s20 = smov 0   ;;  %s2990_s21 = smov 0  }
   0xd   :  { %s2992_s22 = smov 0   ;;  %s2994_s23 = smov 0  }
   0xe   :  { %s2996_s24 = smov 0   ;;  %s2998_s25 = smov 0  }
   0xf   :  { %s3000_s26 = smov 0   ;;  %s3002_s27 = smov 0  }
  0x10   :  { %s3004_s28 = smov 0  }
  0x11 LB: > { %4034 = sst [smem:[#allocation17_spill]] %s2893_s18  ;;  %s2208_s29 = sadd.s32 4294967295, %s2933_s28   ;;  %s2933_s28 = sphi %s3004_s28, %s23_s28   ;;  %s2929_s27 = sphi %s3002_s27, %s4072_s27   ;;  %s2925_s26 = sphi %s3000_s26, %s4071_s26   ;;  %s2921_s25 = sphi %s2998_s25, %s4070_s25   ;;  %s2917_s24 = sphi %s2996_s24, %s4069_s24   ;;  %s2913_s23 = sphi %s2994_s23, %s4068_s23   ;;  %s2909_s22 = sphi %s2992_s22, %s4067_s22   ;;  %s2905_s21 = sphi %s2990_s21, %s4066_s21   ;;  %s2901_s20 = sphi %s2988_s20, %s4065_s20   ;;  %s2897_s19 = sphi %s2986_s19, %s4064_s19   ;;  %s2893_s18 = sphi %s2984_s18, %s4063_s18  }
  0x12   : > { %s2209_s30 = sadd.s32 4294967294, %s2933_s28   ;;  %p55_p0 = scmp.ne.s32.totalorder %s2909_s22, %s2905_s21 }
  0x13   : > { %p3040_p1 = scmp.eq.s32.totalorder %s2208_s29, 0  ;;  %p164_p2 = scmp.ne.s32.totalorder %s2901_s20, %s2897_s19 }
  0x14   : > { %p165_p4 = scmp.eq.s32.totalorder %s2208_s29, 3  ;;  %p170_p5 = scmp.ne.s32.totalorder %s2897_s19, %s2893_s18 }
  0x15   : > { %s4035_s6 = scalar_select %p3040_p1, 1, 0 }
  0x16   : > { %p3049_p3 = por %p3040_p1, %p55_p0  ;;  %p171_p6 = scmp.eq.s32.totalorder %s2209_s30, 3 }
  0x17   : > { %p3055_p7 = por %p165_p4, %p164_p2  ;;  %p2210_p8 = scmp.ge.s32.totalorder %s2933_s28, 1 }
  0x18   : > { %s4036_s8 = scalar_select %p3049_p3, 1, 0 }
  0x19   : > { %s4037_s9 = scalar_select %p3055_p7, 1, 0 }
  0x1a   : > { %p3060_p9 = por %p171_p6, %p170_p5  ;;  %p178_p10 = scmp.lt.s32.totalorder %s2933_s28, 5 }
  0x1b   : > { %4038 = sst [smem:[#allocation18_spill]] %s4037_s9  ;;  %s2935_s12 = smov [#allocation7]  }
  0x1c   : > { %s4039_s10 = scalar_select %p3060_p9, 1, 0 }
  0x1d   : > { %p3065_p11 = pnand %p2210_p8, %p178_p10  ;;  %s190_s13 = sshll.u32 %s2935_s12, 4  ;;  %s191_s13 = int_to_ptr.vmem [resolvable:$true] %s190_s13 }
  0x1e   : > { %4040 = sst [smem:[#allocation19_spill]] %s4039_s10  ;;  %s2936_s15 = smov [#allocation9]  }
  0x1f   : > { %s4041_s11 = scalar_select %p3065_p11, 1, 0 }
  0x20   : > { %p2476_p12 = pneg %p3065_p11  ;;  %s203_s16 = sshll.u32 %s2936_s15, 4  ;;  %s3077_s16 = int_to_ptr.vmem [resolvable:$true] %s203_s16 }
  0x21   : > { %s4043_s1 = sld [smem:[#allocation20_spill]] }
  0x22   : > { %p3073_p13 = pnand %p2476_p12, %p3040_p1 }
  0x24   : > { %p3087_p2 = pneg %p3073_p13 }
  0x27   : > { %s2689_s29 = scalar_lea.hbm %s4043_s1, 256 }
  0x28   : > { %p2690_p0 = scmp.ne.s32.totalorder %s4043_s1, %s2689_s29  ;;  %p2696_p6 = scmp.lt.u32.totalorder %s2689_s29, %s4043_s1 }
  0x2a   : > { %p2692_p4 = pnand %p3087_p2, %p2690_p0 }
  0x2c   : > { %p2693_p5 = pneg %p2692_p4 }
  0x2e   : > { %p2698_p8 = pnand %p2696_p6, %p2693_p5 }
  0x30   : > { %2701 = shalt.err (!%p2698_p8)
}
  0x31   : > { %s2702_s17 = scalar_lea.vmem %s191_s13, 256  ;;  %p2710_p7 = scmp.lt.s32.totalorder %s191_s13, %s191_s13 }
  0x32   : > { %p2703_p10 = scmp.ne.s32.totalorder %s191_s13, %s2702_s17  ;;  %p2711_p1 = scmp.lt.s32.totalorder %s2702_s17, %s2702_s17 }
  0x34   : > { %p2705_p12 = pnand %p2703_p10, %p3087_p2  ;;  %p2712_p3 = por %p2711_p1, %p2710_p7 }
  0x36   : > { %p2706_p9 = pneg %p2705_p12 }
  0x38   : > { %p2713_p11 = pnand %p2712_p3, %p2706_p9 }
  0x3a   : > { %2716 = shalt.err (!%p2713_p11)
}
  0x3b   : > { %s4027_s7 = smov 128   ;;  %s4028_s21 = smov 8  }
  0x3c   : > { %2479 = dma.hbm_to_vmem [thread:$0]  (!%p3073_p13), %s4043_s1, 256, %s191_s13, [#allocation8], %s4027_s7, %s4027_s7, %s4028_s21  }
  0x3d   : > { %s4045_s2 = sld [smem:[#allocation21_spill]] }
  0x43   : > { %s2717_s18 = scalar_lea.hbm %s4045_s2, 4096 }
  0x44   : > { %p2718_p1 = scmp.ne.s32.totalorder %s4045_s2, %s2717_s18  ;;  %p2724_p9 = scmp.lt.u32.totalorder %s2717_s18, %s4045_s2 }
  0x46   : > { %p2720_p3 = pnand %p2718_p1, %p3087_p2 }
  0x48   : > { %p2721_p7 = pneg %p2720_p3 }
  0x4a   : > { %p2726_p11 = pnand %p2724_p9, %p2721_p7 }
  0x4c   : > { %2729 = shalt.err (!%p2726_p11)
}
  0x4d   : > { %s2730_s13 = scalar_lea.vmem %s3077_s16, 4096  ;;  %p2738_p6 = scmp.lt.s32.totalorder %s3077_s16, %s3077_s16 }
  0x4e   : > { %p2731_p0 = scmp.ne.s32.totalorder %s3077_s16, %s2730_s13  ;;  %p2739_p8 = scmp.lt.s32.totalorder %s2730_s13, %s2730_s13 }
  0x50   : > { %p2733_p4 = pnand %p2731_p0, %p3087_p2  ;;  %p2740_p10 = por %p2739_p8, %p2738_p6 }
  0x52   : > { %p2734_p5 = pneg %p2733_p4 }
  0x54   : > { %p2741_p12 = pnand %p2740_p10, %p2734_p5 }
  0x56   : > { %2744 = shalt.err (!%p2741_p12)
}
  0x57   : > { %s2939_s5 = smov 256   ;;  %s2940_s3 = smov 16  }
  0x58   : > { %2482 = dma.hbm_to_vmem [thread:$0]  (!%p3073_p13), %s4045_s2, 4096, %s3077_s16, [#allocation8], %s2939_s5, %s2939_s5, %s2940_s3  }
  0x59   : > { %s2941_s10 = smov [#allocation10]   ;;  %s4046_s4 = sld [smem:[#allocation23_spill]] }
  0x5a   : > { %s219_s29 = sshll.u32 %s2941_s10, 4  ;;  %s220_s29 = int_to_ptr.vmem [resolvable:$true] %s219_s29 }
  0x5f   : > { %s2745_s17 = scalar_lea.hbm %s4046_s4, 4096 }
  0x60   : > { %p2746_p1 = scmp.ne.s32.totalorder %s4046_s4, %s2745_s17  ;;  %p2752_p9 = scmp.lt.u32.totalorder %s2745_s17, %s4046_s4 }
  0x62   : > { %p2748_p3 = pnand %p2746_p1, %p3087_p2 }
  0x64   : > { %p2749_p7 = pneg %p2748_p3 }
  0x66   : > { %p2754_p11 = pnand %p2752_p9, %p2749_p7 }
  0x68   : > { %2757 = shalt.err (!%p2754_p11)
}
  0x69   : > { %s2758_s16 = scalar_lea.vmem %s220_s29, 4096  ;;  %p2766_p6 = scmp.lt.s32.totalorder %s220_s29, %s220_s29 }
  0x6a   : > { %p2759_p0 = scmp.ne.s32.totalorder %s220_s29, %s2758_s16  ;;  %p2767_p8 = scmp.lt.s32.totalorder %s2758_s16, %s2758_s16 }
  0x6c   : > { %p2761_p4 = pnand %p2759_p0, %p3087_p2  ;;  %p2768_p10 = por %p2767_p8, %p2766_p6 }
  0x6e   : > { %p2762_p5 = pneg %p2761_p4 }
  0x70   : > { %p2769_p12 = pnand %p2768_p10, %p2762_p5 }
  0x72   : > { %2772 = shalt.err (!%p2769_p12)
}
  0x73   : > { %s2942_s7 = smov 64   ;;  %s2943_s1 = smov 4  }
  0x74   : > { %2485 = dma.hbm_to_vmem [thread:$0]  (!%p3073_p13), %s4046_s4, 4096, %s220_s29, [#allocation11], %s2942_s7, %s2942_s7, %s2943_s1  }
  0x75   : > { %s32_s5 = sadd.s32 1, %s2925_s26  ;;  %s35_s3 = sadd.s32 1, %s2929_s27 }
  0x76   : > { %p33_p2 = scmp.ge.s32.totalorder %s32_s5, 2  ;;  %s42_s18 = sadd.s32 1, %s2913_s23 }
  0x77   : > { %p49_p1 = scmp.ne.s32.totalorder %s2913_s23, %s2909_s22  ;;  %p50_p3 = scmp.eq.s32.totalorder %s2933_s28, 0 }
  0x78   : > { %s4074_s5 = smov (%p33_p2, %s32_s5), 0  ;;  %s4076_s3 = smov (!%p33_p2, %s35_s3), %s2929_s27 }
  0x79   : > { %s39_s9 = ssub.s32 %s2925_s26, %s4074_s5  ;;  %p37_p7 = scmp.ge.s32.totalorder %s4076_s3, 2 }
  0x7a   : > { %p40_p9 = scmp.eq.s32.totalorder %s39_s9, 0  ;;  %p3158_p13 = por %p50_p3, %p49_p1 }
  0x7b   : > { %s149_s10 = smul.u32 %s2925_s26, %s2929_s27  ;;  %s4078_s3 = smov (%p37_p7, %s4076_s3), 0 }
  0x7c   : > { %s3167_s29 = scalar_select %p40_p9, %s2913_s23, %s42_s18  }
  0x7d   : > { %s150_s30 = smul.u32 %s4078_s3, %s4074_s5  ;;  %p2497_p11 = scmp.lt.s32.totalorder %s2933_s28, 4 }
  0x7e   : > { %s233_s15 = sand.u32 1, %s2913_s23   ;;  %s2302_s17 = sshll.u32 %s2925_s26, 11 }
  0x7f   : > { %s151_s13 = ssub.s32 %s149_s10, %s150_s30  ;;  %s2215_s16 = sshll.u32 %s233_s15, 7 }
  0x80   : > { %p152_p0 = scmp.eq.s32.totalorder %s151_s13, 0  ;;  %s3177_s12 = scalar_lea.hbm %s4011_s0, %s2302_s17 }
  0x81   : > { %s4048_s21 = sadd.s32 1, %s2901_s20  ;;  %s237_s18 = scalar_lea.vmem [#allocation4], %s2215_s16 }
  0x82   : > { %s3182_s9 = scalar_select %p152_p0, %s2901_s20, %s4048_s21  }
  0x83   : > { %s244_s2 = sshll.u32 %s237_s18, 4  ;;  %p3186_p4 = pnand %p2497_p11, %p3158_p13  ;;  %s3190_s2 = int_to_ptr.vmem [resolvable:$true] %s244_s2 }
  0x84   : > { %s3192_s10 = scalar_lea.sflag [#allocation5], %s233_s15  ;;  %s2773_s30 = scalar_lea.hbm %s3177_s12, 2048 }
  0x85   : > { %p2774_p5 = scmp.ne.s32.totalorder %s3177_s12, %s2773_s30  ;;  %p2775_p6 = pneg %p3186_p4 }
  0x86   : > { %s2778_s13 = scalar_lea.hbm %s4011_s0, 4096  ;;  %p2779_p12 = scmp.lt.u32.totalorder %s3177_s12, %s4011_s0 }
  0x87   : > { %p2776_p8 = pnand %p2775_p6, %p2774_p5  ;;  %p2780_p2 = scmp.lt.u32.totalorder %s2778_s13, %s2773_s30 }
  0x88   : > { %p2782_p3 = scmp.lt.u32.totalorder %s2773_s30, %s3177_s12 }
  0x89   : > { %p2777_p10 = pneg %p2776_p8  ;;  %p2781_p1 = por %p2780_p2, %p2779_p12 }
  0x8b   : > { %p2783_p7 = por %p2782_p3, %p2781_p1 }
  0x8d   : > { %p2784_p9 = pnand %p2783_p7, %p2777_p10 }
  0x8f   : > { %2787 = shalt.err (!%p2784_p9)
}
  0x90   : > { %s2788_s15 = scalar_lea.vmem %s3190_s2, 2048  ;;  %s2944_s1 = smov [#allocation4]  }
  0x91   : > { %p2789_p13 = scmp.ne.s32.totalorder %s3190_s2, %s2788_s15  ;;  %s2793_s21 = sshll.u32 %s2944_s1, 4  ;;  %s2794_s21 = int_to_ptr.vmem [resolvable:$false] %s2793_s21 }
  0x92   : > { %s2795_s18 = scalar_lea.vmem %s2794_s21, 4096  ;;  %p2796_p5 = scmp.lt.s32.totalorder %s3190_s2, %s2794_s21 }
  0x93   : > { %p2791_p11 = pnand %p2789_p13, %p2775_p6  ;;  %p2797_p8 = scmp.lt.s32.totalorder %s2795_s18, %s2788_s15 }
  0x95   : > { %p2792_p0 = pneg %p2791_p11  ;;  %p2798_p12 = por %p2797_p8, %p2796_p5 }
  0x97   : > { %p2799_p2 = pnand %p2798_p12, %p2792_p0 }
  0x99   : > { %2802 = shalt.err (!%p2799_p2)
}
  0x9a   : > { %s4050_s30 = smov 8   ;;  %s4051_s17 = smov 128  }
  0x9b   : > { %2489 = dma.hbm_to_vmem [thread:$0]  (!%p3186_p4), %s3177_s12, 2048, %s3190_s2, %s3192_s10, %s4051_s17, %s4051_s17, %s4050_s30  }
  0x9c   : > { %p4052_p6 = scmp.ne.s32.totalorder %s4041_s11, 0 }
  0x9d   : > { %s258_s14 = sand.u32 (!%p4052_p6), 1, %s2909_s22   ;;  %p4053_p10 = scmp.ne.s32.totalorder (!%p4052_p6), %s4036_s8, 0 }
  0x9e   : > { %256 = sbr.rel (%p4052_p6) target bundleno = 1404 (0x57c), region = 40  ;;  %s2219_s13 = sshll.u32 (!%p4052_p6), %s258_s14, 7 }
  0x9f   : > { %s259_s16 = scalar_lea.sflag (!%p4052_p6), [#allocation5], %s258_s14  ;;  %s3226_s7 = scalar_lea.vmem (!%p4052_p6), [#allocation4], %s2219_s13 }
  0xa5   : > { %2876 = dma.done.wait (%p4053_p10), %s259_s16, 2048  }
  0xa6   : > { %2878 = vsyncadd (%p4053_p10), %s259_s16, 4294965248  ;;  %p4054_p1 = scmp.ne.s32.totalorder %s4035_s6, 0 }
  0xa8   : > { %2880 = dma.done.wait (%p4054_p1), [#allocation8], 4352  }
  0xa9   : > { %2882 = vsyncadd (%p4054_p1), [#allocation8], 4294962944 }
  0xaa   : > { %2884 = dma.done.wait (%p4054_p1), [#allocation11], 4096  }
  0xab   : > { %2886 = vsyncadd (%p4054_p1), [#allocation11], 4294963200  ;;  %v3241_v0 = vld [vmem:[%s3226_s7 + $0x10] sm:$0xff]  ;;  %v3244_v1 = vld [vmem:[%s3226_s7] sm:$0xff]  ;;  %s2945_s2 = smov 2   ;;  %s2946_s4 = smov 126  }
  0xac   : > { %325 = vrot.lane.b32.xlu1 %v3241_v0, %s2945_s2  ;;  %321 = vrot.lane.b32.xlu0 %v3244_v1, %s2945_s2  ;;  %v3249_v2 = vld [vmem:[%s3226_s7 + $0x18] sm:$0xff]  ;;  %v3252_v3 = vld [vmem:[%s3226_s7 + $0x8] sm:$0xff]  ;;  %s298_s6 = sand.u32 1, %s2897_s19   ;;  %p480_p4 = scmp.eq.s32.totalorder %s2921_s25, 0 }
  0xad   : > { %v3257_v4 = vld [vmem:[%s3226_s7 + $0x28] sm:$0xff]  ;;  %v3260_v5 = vld [vmem:[%s3226_s7 + $0x20] sm:$0xff]  ;;  %v3265_v6 = vld [vmem:[%s3226_s7 + $0x38] sm:$0xff]  ;;  %s3318_s8 = sshll.u32 %s298_s6, 7  ;;  %p481_p3 = scmp.eq.s32.totalorder %s2917_s24, 0 }
  0xae   : > { %v3268_v7 = vld [vmem:[%s3226_s7 + $0x30] sm:$0xff]  ;;  %v3273_v8 = vld [vmem:[%s3226_s7 + $0x48] sm:$0xff]  ;;  %v3276_v9 = vld [vmem:[%s3226_s7 + $0x40] sm:$0xff]  ;;  %s3452_s12 = scalar_lea.vmem [#allocation12], %s3318_s8 }
  0xaf   : > { %v3281_v10 = vld [vmem:[%s3226_s7 + $0x58] sm:$0xff]  ;;  %v3284_v11 = vld [vmem:[%s3226_s7 + $0x50] sm:$0xff]  ;;  %v3289_v12 = vld [vmem:[%s3226_s7 + $0x68] sm:$0xff]  ;;  %p3321_p7 = pnand %p481_p3, %p480_p4 }
  0xb0   : > { %327 = vrot.lane.b32.xlu1 %v3249_v2, %s2945_s2  ;;  %323 = vrot.lane.b32.xlu0 %v3252_v3, %s2945_s2  ;;  %v3292_v13 = vld [vmem:[%s3226_s7 + $0x60] sm:$0xff]  ;;  %v3297_v14 = vld [vmem:[%s3226_s7 + $0x78] sm:$0xff]  ;;  %v3339_v30 = vld [vmem:[#allocation7 + $0x9] ss:$0 sm:$0xff] }
  0xb1   : > { %v3300_v15 = vld [vmem:[%s3226_s7 + $0x70] sm:$0xff]  ;;  %v3341_v31 = vld [vmem:[#allocation7 + $0x8] ss:$0 sm:$0xff]  ;;  %v411_v32 = vmul.f32 %v3339_v30, %v3244_v1  ;;  %v412_v36 = vmul.f32 %v3339_v30, %v3252_v3  ;;  %v3353_v38 = vld [vmem:[#allocation7 + $0xa] ss:$0 sm:$0xff]  ;;  %v413_v39 = vmul.f32 %v3339_v30, %v3241_v0  ;;  %v414_v40 = vmul.f32 %v3339_v30, %v3249_v2 }
  0xb2   : > { %v416_v51 = vmul.f32 %v3339_v30, %v3257_v4  ;;  %v415_v52 = vmul.f32 %v3339_v30, %v3260_v5  ;;  %v418_v63 = vmul.f32 %v3339_v30, %v3265_v6 }
  0xb4   : > { %331 = vrot.lane.b32.xlu1 %v3257_v4, %s2945_s2  ;;  %329 = vrot.lane.b32.xlu0 %v3260_v5, %s2945_s2 }
  0xb8   : > { %335 = vrot.lane.b32.xlu1 %v3265_v6, %s2945_s2  ;;  %333 = vrot.lane.b32.xlu0 %v3268_v7, %s2945_s2 }
  0xbc   : > { %339 = vrot.lane.b32.xlu1 %v3273_v8, %s2945_s2  ;;  %337 = vrot.lane.b32.xlu0 %v3276_v9, %s2945_s2 }
  0xc0   : > { %343 = vrot.lane.b32.xlu1 %v3281_v10, %s2945_s2  ;;  %341 = vrot.lane.b32.xlu0 %v3284_v11, %s2945_s2 }
  0xc4   : > { %347 = vrot.lane.b32.xlu1 %v3289_v12, %s2945_s2  ;;  %345 = vrot.lane.b32.xlu0 %v3292_v13, %s2945_s2 }
  0xc8   : > { %351 = vrot.lane.b32.xlu1 %v3297_v14, %s2945_s2  ;;  %349 = vrot.lane.b32.xlu0 %v3300_v15, %s2945_s2 }
  0xcc   : > { %355 = vrot.lane.b32.xlu1 %v3252_v3, %s2946_s4  ;;  %353 = vrot.lane.b32.xlu0 %v3244_v1, %s2946_s4 }
  0xd0   : > { %359 = vrot.lane.b32.xlu1 %v3249_v2, %s2946_s4  ;;  %357 = vrot.lane.b32.xlu0 %v3241_v0, %s2946_s4 }
  0xd4   : > { %363 = vrot.lane.b32.xlu1 %v3257_v4, %s2946_s4  ;;  %361 = vrot.lane.b32.xlu0 %v3260_v5, %s2946_s4 }
  0xd8   : > { %367 = vrot.lane.b32.xlu1 %v3265_v6, %s2946_s4  ;;  %365 = vrot.lane.b32.xlu0 %v3268_v7, %s2946_s4 }
  0xdc   : > { %371 = vrot.lane.b32.xlu1 %v3273_v8, %s2946_s4  ;;  %369 = vrot.lane.b32.xlu0 %v3276_v9, %s2946_s4 }
  0xe0   : > { %375 = vrot.lane.b32.xlu1 %v3281_v10, %s2946_s4  ;;  %373 = vrot.lane.b32.xlu0 %v3284_v11, %s2946_s4 }
  0xe4   : > { %379 = vrot.lane.b32.xlu1 %v3289_v12, %s2946_s4  ;;  %377 = vrot.lane.b32.xlu0 %v3292_v13, %s2946_s4 }
  0xe8   : > { %383 = vrot.lane.b32.xlu1 %v3297_v14, %s2946_s4  ;;  %381 = vrot.lane.b32.xlu0 %v3300_v15, %s2946_s4 }
 0x11e   : > { %v326_v16 = vpop.permute.xlu1 %325  ;;  %v322_v17 = vpop.permute.xlu0 %321 }
 0x11f   : > { %v390_v33 = vmul.f32 %v3341_v31, %v322_v17  ;;  %v392_v41 = vmul.f32 %v3341_v31, %v326_v16  ;;  %v417_v16 = vmul.f32 %v3339_v30, %v3268_v7 }
 0x121   : > { %v427_v42 = vadd.f32 %v411_v32, %v390_v33  ;;  %v429_v57 = vadd.f32 %v413_v39, %v392_v41  ;;  %v419_v41 = vmul.f32 %v3339_v30, %v3276_v9 }
 0x122   : > { %v328_v18 = vpop.permute.xlu1 %327  ;;  %v324_v19 = vpop.permute.xlu0 %323 }
 0x123   : > { %v391_v37 = vmul.f32 %v3341_v31, %v324_v19  ;;  %v393_v45 = vmul.f32 %v3341_v31, %v328_v18 }
 0x125   : > { %v428_v46 = vadd.f32 %v412_v36, %v391_v37  ;;  %v430_v58 = vadd.f32 %v414_v40, %v393_v45  ;;  %v420_v40 = vmul.f32 %v3339_v30, %v3273_v8 }
 0x126   : > { %v332_v20 = vpop.permute.xlu1 %331  ;;  %v330_v21 = vpop.permute.xlu0 %329 }
 0x127   : > { %v395_v53 = vmul.f32 %v3341_v31, %v332_v20  ;;  %v394_v54 = vmul.f32 %v3341_v31, %v330_v21 }
 0x129   : > { %v432_v17 = vadd.f32 %v416_v51, %v395_v53  ;;  %v431_v18 = vadd.f32 %v415_v52, %v394_v54  ;;  %v422_v52 = vmul.f32 %v3339_v30, %v3281_v10 }
 0x12a   : > { %v336_v22 = vpop.permute.xlu1 %335  ;;  %v334_v23 = vpop.permute.xlu0 %333 }
 0x12b   : > { %v397_v21 = vmul.f32 %v3341_v31, %v336_v22  ;;  %v396_v32 = vmul.f32 %v3341_v31, %v334_v23 }
 0x12d   : > { %v433_v45 = vadd.f32 %v417_v16, %v396_v32  ;;  %v424_v16 = vmul.f32 %v3339_v30, %v3289_v12 }
 0x12e   : > { %v340_v24 = vpop.permute.xlu1 %339  ;;  %v338_v25 = vpop.permute.xlu0 %337 }
 0x12f   : > { %v398_v22 = vmul.f32 %v3341_v31, %v338_v25 }
 0x131   : > { %v435_v25 = vadd.f32 %v419_v41, %v398_v22  ;;  %v426_v41 = vmul.f32 %v3339_v30, %v3297_v14 }
 0x132   : > { %v3331_v26 = vpop.permute.xlu1 %343  ;;  %v3333_v27 = vpop.permute.xlu0 %341 }
 0x136   : > { %v3335_v28 = vpop.permute.xlu1 %347  ;;  %v3337_v29 = vpop.permute.xlu0 %345 }
 0x13a   : > { %v3346_v34 = vpop.permute.xlu1 %351  ;;  %v3348_v35 = vpop.permute.xlu0 %349 }
 0x13e   : > { %v356_v43 = vpop.permute.xlu1 %355  ;;  %v354_v44 = vpop.permute.xlu0 %353 }
 0x13f   : > { %v449_v47 = vmul.f32 %v3353_v38, %v356_v43  ;;  %v448_v48 = vmul.f32 %v3353_v38, %v354_v44  ;;  %v434_v44 = vadd.f32 %v418_v63, %v397_v21 }
 0x141   : > { %v3363_v49 = vadd.f32 %v449_v47, %v428_v46  ;;  %v3365_v50 = vadd.f32 %v448_v48, %v427_v42  ;;  %v399_v42 = vmul.f32 %v3341_v31, %v340_v24  ;;  %v421_v24 = vmul.f32 %v3339_v30, %v3284_v11 }
 0x142   : > { %v360_v55 = vpop.permute.xlu1 %359  ;;  %v358_v56 = vpop.permute.xlu0 %357 }
 0x143   : > { %v451_v59 = vmul.f32 %v3353_v38, %v360_v55  ;;  %v450_v60 = vmul.f32 %v3353_v38, %v358_v56  ;;  %v436_v53 = vadd.f32 %v420_v40, %v399_v42  ;;  %v401_v56 = vmul.f32 %v3341_v31, %v3331_v26 }
 0x144   : > { %v403_v26 = vmul.f32 %v3341_v31, %v3335_v28  ;;  %v425_v28 = vmul.f32 %v3339_v30, %v3300_v15 }
 0x145   : > { %v3375_v61 = vadd.f32 %v451_v59, %v430_v58  ;;  %v3377_v62 = vadd.f32 %v450_v60, %v429_v57  ;;  %v400_v57 = vmul.f32 %v3341_v31, %v3333_v27  ;;  %v402_v27 = vmul.f32 %v3341_v31, %v3337_v29 }
 0x146   : > { %v364_v19 = vpop.permute.xlu1 %363  ;;  %v362_v20 = vpop.permute.xlu0 %361  ;;  %v440_v42 = vadd.f32 %v424_v16, %v403_v26 }
 0x147   : > { %v453_v33 = vmul.f32 %v3353_v38, %v364_v19  ;;  %v452_v36 = vmul.f32 %v3353_v38, %v362_v20  ;;  %v438_v20 = vadd.f32 %v422_v52, %v401_v56  ;;  %v437_v21 = vadd.f32 %v421_v24, %v400_v57 }
 0x149   : > { %v3387_v37 = vadd.f32 %v453_v33, %v432_v17  ;;  %v3389_v39 = vadd.f32 %v452_v36, %v431_v18  ;;  %v423_v17 = vmul.f32 %v3339_v30, %v3292_v13 }
 0x14a   : > { %v368_v43 = vpop.permute.xlu1 %367  ;;  %v366_v23 = vpop.permute.xlu0 %365 }
 0x14b   : > { %v455_v46 = vmul.f32 %v3353_v38, %v368_v43  ;;  %v454_v47 = vmul.f32 %v3353_v38, %v366_v23  ;;  %v439_v29 = vadd.f32 %v423_v17, %v402_v27  ;;  %v405_v23 = vmul.f32 %v3341_v31, %v3346_v34 }
 0x14d   : > { %v3399_v48 = vadd.f32 %v455_v46, %v434_v44  ;;  %v3401_v51 = vadd.f32 %v454_v47, %v433_v45  ;;  %v404_v44 = vmul.f32 %v3341_v31, %v3348_v35  ;;  %v2947_v31 = vmov (!%p3321_p7), 0.0  }
 0x14e   : > { %v372_v54 = vpop.permute.xlu1 %371  ;;  %v370_v55 = vpop.permute.xlu0 %369  ;;  %486 = vst [vmem:[#allocation2] sm:$0x1] (!%p3321_p7), %v2947_v31  ;;  %487 = vst [vmem:[#allocation3] sm:$0x1] (!%p3321_p7), %v2947_v31 }
 0x14f   : > { %v457_v58 = vmul.f32 %v3353_v38, %v372_v54  ;;  %v456_v59 = vmul.f32 %v3353_v38, %v370_v55 }
 0x151   : > { %v3413_v60 = vadd.f32 %v457_v58, %v436_v53  ;;  %v3415_v63 = vadd.f32 %v456_v59, %v435_v25  ;;  %v442_v53 = vadd.f32 %v426_v41, %v405_v23  ;;  %v441_v25 = vadd.f32 %v425_v28, %v404_v44 }
 0x152   : > { %v376_v18 = vpop.permute.xlu1 %375  ;;  %v374_v19 = vpop.permute.xlu0 %373 }
 0x153   : > { %v459_v32 = vmul.f32 %v3353_v38, %v376_v18  ;;  %v458_v33 = vmul.f32 %v3353_v38, %v374_v19 }
 0x155   : > { %v3427_v36 = vadd.f32 %v459_v32, %v438_v20  ;;  %v3429_v40 = vadd.f32 %v458_v33, %v437_v21 }
 0x156   : > { %v380_v22 = vpop.permute.xlu1 %379  ;;  %v378_v43 = vpop.permute.xlu0 %377 }
 0x157   : > { %v461_v45 = vmul.f32 %v3353_v38, %v380_v22  ;;  %v460_v46 = vmul.f32 %v3353_v38, %v378_v43  ;;  %485 = sbr.rel (%p3321_p7) target bundleno = 350 (0x15e), region = 60 }
 0x159   : > { %v3441_v47 = vadd.f32 %v461_v45, %v440_v42  ;;  %v3443_v52 = vadd.f32 %v460_v46, %v439_v29 }
 0x15a   : > { %v384_v30 = vpop.permute.xlu1 %383  ;;  %v382_v24 = vpop.permute.xlu0 %381 }
 0x15b   : > { %v463_v54 = vmul.f32 %v3353_v38, %v384_v30  ;;  %v462_v55 = vmul.f32 %v3353_v38, %v382_v24 }
 0x15d   : > { %v3447_v34 = vadd.f32 %v463_v54, %v442_v53  ;;  %v3449_v56 = vadd.f32 %v462_v55, %v441_v25 }
 0x15e PF: > { %p2227_p9 = scmp.ne.s32.totalorder %s2921_s25, 0 }
 0x15f   : > { %v492_v35 = vadd.f32 (!%p2227_p9), %v3363_v49, %v3365_v50  ;;  %v516_v38 = vmul.f32 (!%p2227_p9), %v3365_v50, %v3365_v50  ;;  %v517_v57 = vmul.f32 (!%p2227_p9), %v3363_v49, %v3363_v49  ;;  %v518_v59 = vmul.f32 (!%p2227_p9), %v3377_v62, %v3377_v62 }
 0x160   : > { %490 = sbr.rel (%p2227_p9) target bundleno = 398 (0x18e), region = 64  ;;  %v519_v17 = vmul.f32 (!%p2227_p9), %v3375_v61, %v3375_v61  ;;  %v520_v18 = vmul.f32 (!%p2227_p9), %v3389_v39, %v3389_v39  ;;  %v521_v21 = vmul.f32 (!%p2227_p9), %v3387_v37, %v3387_v37  ;;  %v522_v41 = vmul.f32 (!%p2227_p9), %v3401_v51, %v3401_v51 }
 0x161   : > { %v493_v58 = vadd.f32 (!%p2227_p9), %v492_v35, %v3377_v62  ;;  %v532_v26 = vadd.f32 (!%p2227_p9), %v517_v57, %v516_v38  ;;  %v523_v29 = vmul.f32 (!%p2227_p9), %v3399_v48, %v3399_v48  ;;  %v524_v23 = vmul.f32 (!%p2227_p9), %v3415_v63, %v3415_v63 }
 0x162   : > { %v525_v46 = vmul.f32 (!%p2227_p9), %v3413_v60, %v3413_v60  ;;  %v526_v53 = vmul.f32 (!%p2227_p9), %v3429_v40, %v3429_v40  ;;  %v527_v55 = vmul.f32 (!%p2227_p9), %v3427_v36, %v3427_v36  ;;  %v528_v38 = vmul.f32 (!%p2227_p9), %v3443_v52, %v3443_v52 }
 0x163   : > { %v494_v16 = vadd.f32 (!%p2227_p9), %v493_v58, %v3375_v61  ;;  %v533_v19 = vadd.f32 (!%p2227_p9), %v532_v26, %v518_v59  ;;  %v529_v59 = vmul.f32 (!%p2227_p9), %v3441_v47, %v3441_v47  ;;  %v530_v26 = vmul.f32 (!%p2227_p9), %v3449_v56, %v3449_v56 }
 0x165   : > { %v495_v27 = vadd.f32 (!%p2227_p9), %v494_v16, %v3389_v39  ;;  %v534_v32 = vadd.f32 (!%p2227_p9), %v533_v19, %v519_v17  ;;  %v531_v19 = vmul.f32 (!%p2227_p9), %v3447_v34, %v3447_v34 }
 0x167   : > { %v496_v20 = vadd.f32 %v495_v27, %v3387_v37  ;;  %v535_v28 = vadd.f32 %v534_v32, %v520_v18 }
 0x169   : > { %v497_v33 = vadd.f32 %v496_v20, %v3401_v51  ;;  %v536_v22 = vadd.f32 %v535_v28, %v521_v21 }
 0x16b   : > { %v498_v42 = vadd.f32 %v497_v33, %v3399_v48  ;;  %v537_v44 = vadd.f32 %v536_v22, %v522_v41 }
 0x16d   : > { %v499_v43 = vadd.f32 %v498_v42, %v3415_v63  ;;  %v538_v30 = vadd.f32 %v537_v44, %v523_v29  ;;  %v491_v44 = vld [vmem:[#allocation2] sm:$0x1] }
 0x16f   : > { %v500_v45 = vadd.f32 %v499_v43, %v3413_v60  ;;  %v539_v25 = vadd.f32 %v538_v30, %v524_v23 }
 0x171   : > { %v501_v24 = vadd.f32 %v500_v45, %v3429_v40  ;;  %v540_v31 = vadd.f32 %v539_v25, %v525_v46 }
 0x173   : > { %v502_v54 = vadd.f32 %v501_v24, %v3427_v36  ;;  %v541_v57 = vadd.f32 %v540_v31, %v526_v53  ;;  %v515_v53 = vld [vmem:[#allocation3] sm:$0x1] }
 0x175   : > { %v503_v35 = vadd.f32 %v502_v54, %v3443_v52  ;;  %v542_v16 = vadd.f32 %v541_v57, %v527_v55 }
 0x177   : > { %v504_v58 = vadd.f32 %v503_v35, %v3441_v47  ;;  %v543_v27 = vadd.f32 %v542_v16, %v528_v38 }
 0x179   : > { %v505_v17 = vadd.f32 %v504_v58, %v3449_v56  ;;  %v544_v20 = vadd.f32 %v543_v27, %v529_v59 }
 0x17b   : > { %v506_v18 = vadd.f32 %v505_v17, %v3447_v34  ;;  %v545_v32 = vadd.f32 %v544_v20, %v530_v26 }
 0x17d   : > { %v507_v21 = vrot.slane %v506_v18, 4  ;;  %v546_v41 = vadd.f32 %v545_v32, %v531_v19 }
 0x17f   : > { %v508_v33 = vadd.f32 %v507_v21, %v506_v18  ;;  %v547_v42 = vrot.slane %v546_v41, 4 }
 0x181   : > { %v509_v28 = vrot.slane %v508_v33, 2  ;;  %v548_v22 = vadd.f32 %v547_v42, %v546_v41 }
 0x183   : > { %v510_v29 = vadd.f32 %v509_v28, %v508_v33  ;;  %v549_v23 = vrot.slane %v548_v22, 2 }
 0x185   : > { %v511_v43 = vrot.slane %v510_v29, 1  ;;  %v550_v46 = vadd.f32 %v549_v23, %v548_v22 }
 0x187   : > { %v512_v45 = vadd.f32 %v511_v43, %v510_v29  ;;  %v551_v24 = vrot.slane %v550_v46, 1 }
 0x189   : > { %v513_v30 = vadd.f32 %v512_v45, %v491_v44  ;;  %v552_v25 = vadd.f32 %v551_v24, %v550_v46 }
 0x18b   : > { %514 = vst [vmem:[#allocation2] sm:$0x1] %v513_v30  ;;  %v553_v54 = vadd.f32 %v552_v25, %v515_v53 }
 0x18d   : > { %554 = vst [vmem:[#allocation3] sm:$0x1] %v553_v54 }
 0x18e PF: > { %p2228_p13 = scmp.ne.s32.totalorder %s2921_s25, 1 }
 0x18f   : > { %v559_v55 = vld [vmem:[#allocation7] sm:$0xff] (!%p2228_p13)  ;;  %v2948_v35 = vmov (!%p2228_p13), 0.0   ;;  %vm2949_vm0 = vmmov (!%p2228_p13), 0   ;;  %vm702_vm1 = vcmask (!%p2228_p13), 64512   ;;  %v2612_v26 = vld [vmem:[#allocation9 + $0xc] ss:$16 sps:$4 sm:$0xff] (!%p2228_p13)  }
 0x190   : > { %558 = sbr.rel (%p2228_p13) target bundleno = 1376 (0x560), region = 68  ;;  %2440 = vmatprep.subr.mxu0 (!%p2228_p13), %v2948_v35  ;;  %2445 = vmatprep.subr.mxu1 (!%p2228_p13), %v2948_v35  ;;  %v2609_v17 = vld [vmem:[#allocation9 + $0x4] ss:$16 sps:$4 sm:$0xff] (!%p2228_p13)   ;;  %v2607_v27 = vld [vmem:[#allocation9] ss:$16 sps:$4 sm:$0xff] (!%p2228_p13)   ;;  %s4056_s1 = sld [smem:[#allocation22_spill]] (!%p2228_p13) }
 0x191   : > { %2441 = vmatpush3.xpose.msra.mxu0 (!%p2228_p13), %v559_v55  ;;  %2446 = vmatpush3.xpose.msra.mxu1 (!%p2228_p13), %v559_v55  ;;  %v2610_v18 = vld [vmem:[#allocation9 + $0x8] ss:$16 sps:$4 sm:$0xff] (!%p2228_p13)   ;;  %v2615_v19 = vld [vmem:[#allocation9 + $0x24] ss:$16 sps:$4 sm:$0xff] (!%p2228_p13)   ;;  %v2618_v20 = vld [vmem:[#allocation9 + $0x2c] ss:$16 sps:$4 sm:$0xff] (!%p2228_p13)  }
 0x192   : > { %v560_v31 = vld [vmem:[#allocation2] sm:$0x1] (!%p2228_p13)  ;;  %2442 = vmatprep.mubr.msk.f32.mxu0 (!%p2228_p13), %vm2949_vm0, %v2948_v35  ;;  %2447 = vmatprep.mubr.msk.f32.mxu1 (!%p2228_p13), %vm2949_vm0, %v2948_v35  ;;  %v2613_v21 = vld [vmem:[#allocation9 + $0x20] ss:$16 sps:$4 sm:$0xff] (!%p2228_p13)   ;;  %v2616_v32 = vld [vmem:[#allocation9 + $0x28] ss:$16 sps:$4 sm:$0xff] (!%p2228_p13)  }
 0x193   : > { %2450 = vmatprep.subr.mxu0 (!%p2228_p13), %v2948_v35  ;;  %2455 = vmatprep.subr.mxu1 (!%p2228_p13), %v2948_v35  ;;  %v2621_v33 = vld [vmem:[#allocation9 + $0x44] ss:$16 sps:$4 sm:$0xff] (!%p2228_p13)   ;;  %v2624_v41 = vld [vmem:[#allocation9 + $0x4c] ss:$16 sps:$4 sm:$0xff] (!%p2228_p13)   ;;  %v2619_v28 = vld [vmem:[#allocation9 + $0x40] ss:$16 sps:$4 sm:$0xff] (!%p2228_p13)  }
 0x194   : > { %v631_v38 = vld [vmem:[#allocation3] sm:$0x1] (!%p2228_p13)  ;;  %2443 = vmatmul.mubr.f32.vlgmr.msra.gmra.mrb[0].mxu0 (!%p2228_p13), %v560_v31  ;;  %v2622_v42 = vld [vmem:[#allocation9 + $0x48] ss:$16 sps:$4 sm:$0xff] (!%p2228_p13)   ;;  %v2627_v29 = vld [vmem:[#allocation9 + $0x64] ss:$16 sps:$4 sm:$0xff] (!%p2228_p13)  }
 0x195   : > { %2448 = vmatmul.mubr.f32.vlgmr.msra.gmra.mrb[0].mxu1 (!%p2228_p13), %v631_v38  ;;  %2451 = vmatpush3.msra.mxu0 (!%p2228_p13), %v559_v55  ;;  %v2630_v22 = vld [vmem:[#allocation9 + $0x6c] ss:$16 sps:$4 sm:$0xff] (!%p2228_p13)   ;;  %v2625_v43 = vld [vmem:[#allocation9 + $0x60] ss:$16 sps:$4 sm:$0xff] (!%p2228_p13)   ;;  %v2628_v23 = vld [vmem:[#allocation9 + $0x68] ss:$16 sps:$4 sm:$0xff] (!%p2228_p13)  }
 0x196   : > { %2456 = vmatpush3.msra.mxu1 (!%p2228_p13), %v559_v55  ;;  %2452 = vmatprep.mubr.msk.f32.mxu0 (!%p2228_p13), %vm2949_vm0, %v2948_v35  ;;  %v2633_v44 = vld [vmem:[#allocation9 + $0x84] ss:$16 sps:$4 sm:$0xff] (!%p2228_p13)   ;;  %v2636_v45 = vld [vmem:[#allocation9 + $0x8c] ss:$16 sps:$4 sm:$0xff] (!%p2228_p13)   ;;  %v2631_v46 = vld [vmem:[#allocation9 + $0x80] ss:$16 sps:$4 sm:$0xff] (!%p2228_p13)  }
 0x197   : > { %2457 = vmatprep.mubr.msk.f32.mxu1 %vm2949_vm0, %v2948_v35  ;;  %1122 = vmatprep.subr.bf16.mxu0 %v2609_v17  ;;  %v2634_v30 = vld [vmem:[#allocation9 + $0x88] ss:$16 sps:$4 sm:$0xff]   ;;  %v2639_v24 = vld [vmem:[#allocation9 + $0xa4] ss:$16 sps:$4 sm:$0xff]   ;;  %v2642_v53 = vld [vmem:[#allocation9 + $0xac] ss:$16 sps:$4 sm:$0xff]  }
 0x198   : > { %1235 = vmatprep.subr.bf16.mxu1 %v2612_v26  ;;  %v2637_v25 = vld [vmem:[#allocation9 + $0xa0] ss:$16 sps:$4 sm:$0xff]   ;;  %v2640_v54 = vld [vmem:[#allocation9 + $0xa8] ss:$16 sps:$4 sm:$0xff]   ;;  %v2645_v55 = vld [vmem:[#allocation9 + $0xc4] ss:$16 sps:$4 sm:$0xff]  }
 0x199   : > { %v2648_v31 = vld [vmem:[#allocation9 + $0xcc] ss:$16 sps:$4 sm:$0xff]   ;;  %v2643_v35 = vld [vmem:[#allocation9 + $0xc0] ss:$16 sps:$4 sm:$0xff]   ;;  %v2646_v38 = vld [vmem:[#allocation9 + $0xc8] ss:$16 sps:$4 sm:$0xff]  }
 0x19a   : > { %v2654_v17 = vld [vmem:[#allocation9 + $0xec] ss:$16 sps:$4 sm:$0xff]   ;;  %v2655_v26 = vld [vmem:[#allocation10 + $0x40] sm:$0xff]  }
 0x267   : > { %v627_v57 = vpop.f32.mrb[0].mxu0 }
 0x268   : > { %v698_v58 = vpop.f32.mrb[0].mxu1  ;;  %v2444_v59 = vpop.f32.mrb[1].mxu0  ;;  %2453 = vmatmul.mubr.msk.f32.vlgmr.msra.gmra.mrb[2].mxu0 %vm702_vm1, %v627_v57  ;;  %v2649_v57 = vld [vmem:[#allocation9 + $0xe0] ss:$16 sps:$4 sm:$0xff]  }
 0x269   : > { %v2449_v16 = vpop.f32.mrb[1].mxu1  ;;  %2458 = vmatmul.mubr.msk.f32.vlgmr.msra.gmra.mrb[2].mxu1 %vm702_vm1, %v698_v58  ;;  %1123 = vmatpush1.bf16.msra.mxu0 %v2607_v27  ;;  %v2651_v58 = vld [vmem:[#allocation9 + $0xe4] ss:$16 sps:$4 sm:$0xff]   ;;  %v2652_v59 = vld [vmem:[#allocation9 + $0xe8] ss:$16 sps:$4 sm:$0xff]  }
 0x26a   : > { %1236 = vmatpush1.bf16.msra.mxu1 %v2610_v18  ;;  %1124 = vmatprep.subr.bf16.mxu0 %v2615_v19  ;;  %v2950_v16 = vmov 0   ;;  %v2657_v27 = vld [vmem:[#allocation10 + $0xc0] sm:$0xff]  }
 0x26b   : > { %1237 = vmatprep.subr.bf16.mxu1 %v2618_v20  ;;  %1154 = vmatprep.mubr.bf16.mxu0 %v2950_v16 }
 0x26c   : > { %1267 = vmatprep.mubr.bf16.mxu1 %v2950_v16 }
 0x26d   : > { %1125 = vmatpush1.bf16.msra.mxu0 %v2613_v21 }
 0x26e   : > { %1238 = vmatpush1.bf16.msra.mxu1 %v2616_v32  ;;  %1126 = vmatprep.subr.bf16.mxu0 %v2621_v33 }
 0x26f   : > { %1239 = vmatprep.subr.bf16.mxu1 %v2624_v41 }
 0x271   : > { %1127 = vmatpush1.bf16.msra.mxu0 %v2619_v28 }
 0x272   : > { %1240 = vmatpush1.bf16.msra.mxu1 %v2622_v42  ;;  %1128 = vmatprep.subr.bf16.mxu0 %v2627_v29  ;;  %v860_v29 = vlaneseq }
 0x273   : > { %1241 = vmatprep.subr.bf16.mxu1 %v2630_v22 }
 0x274   : > { %v3508_v22 = vshrl.u32 %v860_v29, 7 }
 0x275   : > { %1129 = vmatpush1.bf16.msra.mxu0 %v2625_v43  ;;  %v853_v43 = vld [vmem:[#allocation7 + $0xb] sm:$0x1] }
 0x276   : > { %1242 = vmatpush1.bf16.msra.mxu1 %v2628_v23  ;;  %1130 = vmatprep.subr.bf16.mxu0 %v2633_v44  ;;  %v3511_v23 = vsub.s32 0, %v3508_v22 }
 0x277   : > { %1243 = vmatprep.subr.bf16.mxu1 %v2636_v45 }
 0x279   : > { %1131 = vmatpush1.bf16.msra.mxu0 %v2631_v46  ;;  %v857_v46 = vld [vmem:[#allocation7 + $0xc] sm:$0x1] }
 0x27a   : > { %1244 = vmatpush1.bf16.msra.mxu1 %v2634_v30  ;;  %1132 = vmatprep.subr.bf16.mxu0 %v2639_v24 }
 0x27b   : > { %1245 = vmatprep.subr.bf16.mxu1 %v2642_v53 }
 0x27d   : > { %1133 = vmatpush1.bf16.msra.mxu0 %v2637_v25 }
 0x27e   : > { %1246 = vmatpush1.bf16.msra.mxu1 %v2640_v54  ;;  %1134 = vmatprep.subr.bf16.mxu0 %v2645_v55 }
 0x27f   : > { %1247 = vmatprep.subr.bf16.mxu1 %v2648_v31 }
 0x281   : > { %1135 = vmatpush1.bf16.msra.mxu0 %v2643_v35 }
 0x282   : > { %1248 = vmatpush1.bf16.msra.mxu1 %v2646_v38  ;;  %1136 = vmatprep.subr.bf16.mxu0 %v2651_v58 }
 0x283   : > { %1249 = vmatprep.subr.bf16.mxu1 %v2654_v17 }
 0x285   : > { %1137 = vmatpush1.bf16.msra.mxu0 %v2649_v57 }
 0x286   : > { %1250 = vmatpush1.bf16.msra.mxu1 %v2652_v59  ;;  %2312 = vmatprep.subr.bf16.mxu0 %v2655_v26 }
 0x287   : > { %2376 = vmatprep.subr.bf16.mxu1 %v2657_v27 }
 0x33b   : > { %v772_v18 = vpop.f32.mrb[2].mxu0 }
 0x33c   : > { %v846_v19 = vpop.f32.mrb[2].mxu1  ;;  %v776_v20 = vmul.f32 0.00024414063, %v772_v18  ;;  %v2454_v21 = vpop.f32.mrb[3].mxu0 }
 0x33d   : > { %v850_v32 = vmul.f32 0.00024414063, %v846_v19  ;;  %v2459_v33 = vpop.f32.mrb[3].mxu1 }
 0x33e   : > { %v851_v41 = vmul.f32 %v776_v20, %v776_v20  ;;  %v2656_v33 = vld [vmem:[#allocation10] sm:$0xff]  }
 0x340   : > { %v852_v28 = vsub.f32 %v850_v32, %v851_v41 }
 0x342   : > { %v854_v42 = vadd.f32 1e-05, %v852_v28 }
 0x344   : > { %2687 = vrsqrt.f32 %v854_v42  ;;  %v2661_v42 = vld [vmem:[#allocation10 + $0xc8] sm:$0xff]  }
 0x34e   : > { %v2688_v44 = vpop.eup %2687 }
 0x34f   : > { %v856_v45 = vmul.f32 %v2688_v44, %v853_v43 }
 0x351   : > { %v858_v30 = vmul.f32 %v856_v45, %v776_v20  ;;  %v863_v24 = vrot.slane %v856_v45, %v3511_v23 }
 0x353   : > { %v859_v53 = vsub.f32 %v857_v46, %v858_v30  ;;  %v864_v25 = vmul.f32 %v863_v24, %v3365_v50  ;;  %v865_v54 = vmul.f32 %v863_v24, %v3363_v49  ;;  %v866_v55 = vmul.f32 %v863_v24, %v3377_v62 }
 0x354   : > { %v867_v31 = vmul.f32 %v863_v24, %v3375_v61  ;;  %v868_v35 = vmul.f32 %v863_v24, %v3389_v39  ;;  %v869_v38 = vmul.f32 %v863_v24, %v3387_v37  ;;  %v870_v57 = vmul.f32 %v863_v24, %v3401_v51 }
 0x355   : > { %v883_v58 = vrot.slane %v859_v53, %v3511_v23  ;;  %v871_v59 = vmul.f32 %v863_v24, %v3399_v48  ;;  %v872_v17 = vmul.f32 %v863_v24, %v3415_v63  ;;  %v873_v50 = vmul.f32 %v863_v24, %v3413_v60 }
 0x356   : > { %v874_v49 = vmul.f32 %v863_v24, %v3429_v40  ;;  %v875_v62 = vmul.f32 %v863_v24, %v3427_v36  ;;  %v876_v61 = vmul.f32 %v863_v24, %v3443_v52  ;;  %v877_v39 = vmul.f32 %v863_v24, %v3441_v47  ;;  %v2658_v40 = vld [vmem:[#allocation10 + $0x80] sm:$0xff]   ;;  %v2659_v47 = vld [vmem:[#allocation10 + $0x48] sm:$0xff]  }
 0x357   : > { %v884_v26 = vadd.f32 %v883_v58, %v864_v25  ;;  %v885_v37 = vadd.f32 %v883_v58, %v865_v54  ;;  %v886_v27 = vadd.f32 %v883_v58, %v866_v55  ;;  %v887_v51 = vadd.f32 %v883_v58, %v867_v31  ;;  %v2660_v25 = vld [vmem:[#allocation10 + $0x8] sm:$0xff]  }
 0x358   : > { %v888_v18 = vadd.f32 %v883_v58, %v868_v35  ;;  %v889_v19 = vadd.f32 %v883_v58, %v869_v38  ;;  %v890_v20 = vadd.f32 %v883_v58, %v870_v57  ;;  %v891_v48 = vadd.f32 %v883_v58, %v871_v59  ;;  %v2662_v54 = vld [vmem:[#allocation10 + $0x88] sm:$0xff]   ;;  %v2663_v35 = vld [vmem:[#allocation10 + $0x50] sm:$0xff]  }
 0x359   : > { %v900_v21 = vpack.c.bf16 %v885_v37, %v884_v26  ;;  %v901_v63 = vpack.c.bf16 %v887_v51, %v886_v27  ;;  %v892_v32 = vadd.f32 %v883_v58, %v872_v17  ;;  %v893_v60 = vadd.f32 %v883_v58, %v873_v50  ;;  %v2665_v38 = vld [vmem:[#allocation10 + $0xd0] sm:$0xff]   ;;  %v2670_v17 = vld [vmem:[#allocation10 + $0x98] sm:$0xff]   ;;  %v2671_v50 = vld [vmem:[#allocation10 + $0x60] sm:$0xff]  }
 0x35a   : > { %v902_v41 = vpack.c.bf16 %v889_v19, %v888_v18  ;;  %v3529_v36 = vpack.c.bf16 %v891_v48, %v890_v20  ;;  %v894_v52 = vadd.f32 %v883_v58, %v874_v49  ;;  %v895_v28 = vadd.f32 %v883_v58, %v875_v62  ;;  %v2664_v59 = vld [vmem:[#allocation10 + $0x10] sm:$0xff]   ;;  %v2673_v49 = vld [vmem:[#allocation10 + $0xe0] sm:$0xff]   ;;  %v2677_v26 = vld [vmem:[#allocation10 + $0xe8] sm:$0xff]  }
 0x35b   : > { %1155 = vmatmul.mubr.bf16.vlgmr.msra.gmra.mrb[4].mxu0 %v900_v21  ;;  %1268 = vmatmul.mubr.bf16.vlgmr.msra.gmra.mrb[4].mxu1 %v900_v21  ;;  %v3531_v29 = vpack.c.bf16 %v893_v60, %v892_v32  ;;  %v896_v43 = vadd.f32 %v883_v58, %v876_v61  ;;  %v897_v44 = vadd.f32 %v883_v58, %v877_v39  ;;  %v2672_v62 = vld [vmem:[#allocation10 + $0x20] sm:$0xff]   ;;  %v2675_v39 = vld [vmem:[#allocation10 + $0x68] sm:$0xff]   ;;  %v2679_v51 = vld [vmem:[#allocation10 + $0x70] sm:$0xff]   ;;  %v952_v60 = vsub.s32 2, %v3508_v22 }
 0x35c   : > { %1164 = vmatprep.mubr.bf16.mxu0 %v2950_v16  ;;  %1277 = vmatprep.mubr.bf16.mxu1 %v2950_v16  ;;  %v3535_v45 = vpack.c.bf16 %v895_v28, %v894_v52  ;;  %v878_v46 = vmul.f32 %v863_v24, %v3449_v56  ;;  %v879_v30 = vmul.f32 %v863_v24, %v3447_v34  ;;  %v2666_v56 = vld [vmem:[#allocation10 + $0x90] sm:$0xff]   ;;  %v2667_v34 = vld [vmem:[#allocation10 + $0x58] sm:$0xff]   ;;  %v2674_v61 = vld [vmem:[#allocation10 + $0xa0] sm:$0xff]  }
 0x35d   : > { %v3539_v53 = vpack.c.bf16 %v897_v44, %v896_v43  ;;  %2313 = vmatpush3.bf16.msra.mxu0 %v2656_v33  ;;  %2377 = vmatpush3.bf16.msra.mxu1 %v2658_v40  ;;  %v2669_v24 = vld [vmem:[#allocation10 + $0xd8] sm:$0xff]   ;;  %v2676_v37 = vld [vmem:[#allocation10 + $0x28] sm:$0xff]   ;;  %v2681_v18 = vld [vmem:[#allocation10 + $0xf0] sm:$0xff]   ;;  %v956_v40 = vsub.s32 3, %v3508_v22 }
 0x35e   : > { %v898_v55 = vadd.f32 %v883_v58, %v878_v46  ;;  %v899_v31 = vadd.f32 %v883_v58, %v879_v30  ;;  %2314 = vmatprep.subr.bf16.mxu0 %v2659_v47  ;;  %2378 = vmatprep.subr.bf16.mxu1 %v2661_v42  ;;  %v2668_v58 = vld [vmem:[#allocation10 + $0x18] sm:$0xff]   ;;  %v2678_v27 = vld [vmem:[#allocation10 + $0xa8] sm:$0xff]   ;;  %v2680_v19 = vld [vmem:[#allocation10 + $0x30] sm:$0xff]  }
 0x35f   : > { %v2682_v20 = vld [vmem:[#allocation10 + $0xb0] sm:$0xff]   ;;  %v2683_v48 = vld [vmem:[#allocation10 + $0x78] sm:$0xff]  }
 0x360   : > { %v3541_v57 = vpack.c.bf16 %v899_v31, %v898_v55  ;;  %v2684_v21 = vld [vmem:[#allocation10 + $0x38] sm:$0xff]   ;;  %v940_v33 = vld [vmem:[%s4056_s1] sm:$0xf] }
 0x361   : > { %2315 = vmatpush3.bf16.msra.mxu0 %v2660_v25  ;;  %2379 = vmatpush3.bf16.msra.mxu1 %v2662_v54  ;;  %v2686_v32 = vld [vmem:[#allocation10 + $0xb8] sm:$0xff]   ;;  %v3578_v28 = vrot.slane %v940_v33, %v956_v40 }
 0x362   : > { %2316 = vmatprep.subr.bf16.mxu0 %v2663_v35  ;;  %2380 = vmatprep.subr.bf16.mxu1 %v2665_v38 }
 0x363   : > { %1165 = vmatmul.mubr.bf16.gmra.mrb[8].mxu0 %v901_v63  ;;  %1278 = vmatmul.mubr.bf16.gmra.mrb[8].mxu1 %v901_v63  ;;  %v2685_v63 = vld [vmem:[#allocation10 + $0xf8] sm:$0xff]  }
 0x364   : > { %1174 = vmatprep.mubr.bf16.mxu0 %v2950_v16  ;;  %1287 = vmatprep.mubr.bf16.mxu1 %v2950_v16 }
 0x365   : > { %2317 = vmatpush3.bf16.msra.mxu0 %v2664_v59  ;;  %2381 = vmatpush3.bf16.msra.mxu1 %v2666_v56 }
 0x366   : > { %2318 = vmatprep.subr.bf16.mxu0 %v2667_v34  ;;  %2382 = vmatprep.subr.bf16.mxu1 %v2669_v24 }
 0x369   : > { %2319 = vmatpush3.bf16.msra.mxu0 %v2668_v58  ;;  %2383 = vmatpush3.bf16.msra.mxu1 %v2670_v17 }
 0x36a   : > { %2320 = vmatprep.subr.bf16.mxu0 %v2671_v50  ;;  %2384 = vmatprep.subr.bf16.mxu1 %v2673_v49 }
 0x36b   : > { %1175 = vmatmul.mubr.bf16.gmra.mrb[12].mxu0 %v902_v41  ;;  %1288 = vmatmul.mubr.bf16.gmra.mrb[12].mxu1 %v902_v41  ;;  %v3572_v41 = vrot.slane %v940_v33, %v3511_v23 }
 0x36c   : > { %1184 = vmatprep.mubr.bf16.mxu0 %v2950_v16  ;;  %1297 = vmatprep.mubr.bf16.mxu1 %v2950_v16 }
 0x36d   : > { %2321 = vmatpush3.bf16.msra.mxu0 %v2672_v62  ;;  %2385 = vmatpush3.bf16.msra.mxu1 %v2674_v61 }
 0x36e   : > { %2322 = vmatprep.subr.bf16.mxu0 %v2675_v39  ;;  %2386 = vmatprep.subr.bf16.mxu1 %v2677_v26 }
 0x371   : > { %2323 = vmatpush3.bf16.msra.mxu0 %v2676_v37  ;;  %2387 = vmatpush3.bf16.msra.mxu1 %v2678_v27 }
 0x372   : > { %2324 = vmatprep.subr.bf16.mxu0 %v2679_v51  ;;  %2388 = vmatprep.subr.bf16.mxu1 %v2681_v18 }
 0x373   : > { %1185 = vmatmul.mubr.bf16.gmra.mrb[16].mxu0 %v3529_v36  ;;  %1298 = vmatmul.mubr.bf16.gmra.mrb[16].mxu1 %v3529_v36  ;;  %v3574_v36 = vrot.slane %v940_v33, %v952_v60 }
 0x374   : > { %1194 = vmatprep.mubr.bf16.mxu0 %v2950_v16  ;;  %1307 = vmatprep.mubr.bf16.mxu1 %v2950_v16 }
 0x375   : > { %2325 = vmatpush3.bf16.msra.mxu0 %v2680_v19  ;;  %2389 = vmatpush3.bf16.msra.mxu1 %v2682_v20 }
 0x376   : > { %2326 = vmatprep.subr.bf16.mxu0 %v2683_v48  ;;  %2390 = vmatprep.subr.bf16.mxu1 %v2685_v63 }
 0x379   : > { %2327 = vmatpush3.bf16.msra.mxu0 %v2684_v21  ;;  %2391 = vmatpush3.bf16.msra.mxu1 %v2686_v32 }
 0x37b   : > { %1195 = vmatmul.mubr.bf16.gmra.mrb[20].mxu0 %v3531_v29  ;;  %1308 = vmatmul.mubr.bf16.gmra.mrb[20].mxu1 %v3531_v29 }
 0x37c   : > { %1204 = vmatprep.mubr.bf16.mxu0 %v2950_v16  ;;  %1317 = vmatprep.mubr.bf16.mxu1 %v2950_v16 }
 0x383   : > { %1205 = vmatmul.mubr.bf16.gmra.mrb[24].mxu0 %v3535_v45  ;;  %1318 = vmatmul.mubr.bf16.gmra.mrb[24].mxu1 %v3535_v45 }
 0x384   : > { %1214 = vmatprep.mubr.bf16.mxu0 %v2950_v16  ;;  %1327 = vmatprep.mubr.bf16.mxu1 %v2950_v16 }
 0x38b   : > { %1215 = vmatmul.mubr.bf16.gmra.mrb[28].mxu0 %v3539_v53  ;;  %1328 = vmatmul.mubr.bf16.gmra.mrb[28].mxu1 %v3539_v53 }
 0x38c   : > { %1224 = vmatprep.mubr.bf16.mxu0 %v2950_v16  ;;  %1337 = vmatprep.mubr.bf16.mxu1 %v2950_v16  ;;  %v948_v16 = vsub.s32 1, %v3508_v22 }
 0x38e   : > { %v3576_v52 = vrot.slane %v940_v33, %v948_v16 }
 0x393   : > { %1225 = vmatmul.mubr.bf16.gmra.mrb[32].mxu0 %v3541_v57  ;;  %1338 = vmatmul.mubr.bf16.gmra.mrb[32].mxu1 %v3541_v57 }
 0x42e   : > { %v1156_v47 = vpop.f32.mrb[4].mxu0  ;;  %v1269_v42 = vpop.f32.mrb[4].mxu1 }
 0x42f   : > { %v1157_v29 = vadd.f32 %v1156_v47, %v3572_v41  ;;  %v1270_v43 = vadd.f32 %v1269_v42, %v3574_v36  ;;  %v1158_v44 = vpop.f32.mrb[5].mxu0  ;;  %v1271_v45 = vpop.f32.mrb[5].mxu1 }
 0x430   : > { %v1159_v46 = vadd.f32 %v1158_v44, %v3576_v52  ;;  %v1272_v22 = vadd.f32 %v1271_v45, %v3578_v28  ;;  %v1160_v23 = vpop.f32.mrb[6].mxu0  ;;  %v1273_v30 = vpop.f32.mrb[6].mxu1 }
 0x431   : > { %vm1348_vm2 = vcmp.ge.f32.partialorder %v1157_v29, 0.0  ;;  %v1412_v53 = vmul.f32 0.1, %v1157_v29  ;;  %vm1350_vm3 = vcmp.ge.f32.partialorder %v1270_v43, 0.0  ;;  %v1414_v25 = vmul.f32 0.1, %v1270_v43 }
 0x432   : > { %vm1349_vm4 = vcmp.ge.f32.partialorder %v1159_v46, 0.0  ;;  %v1413_v54 = vmul.f32 0.1, %v1159_v46  ;;  %v1161_v55 = vadd.f32 %v1160_v23, %v3572_v41  ;;  %v1274_v31 = vadd.f32 %v1273_v30, %v3574_v36  ;;  %v1162_v35 = vpop.f32.mrb[7].mxu0  ;;  %v1275_v38 = vpop.f32.mrb[7].mxu1 }
 0x433   : > { %vm1351_vm5 = vcmp.ge.f32.partialorder %v1272_v22, 0.0  ;;  %v1415_v57 = vmul.f32 0.1, %v1272_v22  ;;  %v1163_v59 = vadd.f32 %v1162_v35, %v3576_v52  ;;  %v1276_v56 = vadd.f32 %v1275_v38, %v3578_v28 }
 0x434   : > { %vm1352_vm6 = vcmp.ge.f32.partialorder %v1161_v55, 0.0  ;;  %v1416_v34 = vmul.f32 0.1, %v1161_v55  ;;  %vm1354_vm7 = vcmp.ge.f32.partialorder %v1274_v31, 0.0  ;;  %v1418_v24 = vmul.f32 0.1, %v1274_v31 }
 0x435   : > { %vm1353_vm8 = vcmp.ge.f32.partialorder %v1163_v59, 0.0  ;;  %v1417_v58 = vmul.f32 0.1, %v1163_v59  ;;  %vm1355_vm9 = vcmp.ge.f32.partialorder %v1276_v56, 0.0  ;;  %v1419_v17 = vmul.f32 0.1, %v1276_v56 }
 0x436   : > { %v1476_v50 = vsel %vm1348_vm2, %v1157_v29, %v1412_v53  ;;  %v1478_v49 = vsel %vm1350_vm3, %v1270_v43, %v1414_v25  ;;  %v1480_v62 = vsel %vm1352_vm6, %v1161_v55, %v1416_v34  ;;  %v1482_v61 = vsel %vm1354_vm7, %v1274_v31, %v1418_v24  ;;  %v1166_v39 = vpop.f32.mrb[8].mxu0  ;;  %v1279_v26 = vpop.f32.mrb[8].mxu1 }
 0x437   : > { %v1540_v37 = vpack.c.bf16 %v1480_v62, %v1476_v50  ;;  %v1542_v27 = vpack.c.bf16 %v1482_v61, %v1478_v49  ;;  %v1167_v51 = vadd.f32 %v1166_v39, %v3572_v41  ;;  %v1280_v18 = vadd.f32 %v1279_v26, %v3574_v36  ;;  %v1168_v19 = vpop.f32.mrb[9].mxu0  ;;  %v1281_v20 = vpop.f32.mrb[9].mxu1 }
 0x438   : > { %v1169_v48 = vadd.f32 %v1168_v19, %v3576_v52  ;;  %v1282_v21 = vadd.f32 %v1281_v20, %v3578_v28  ;;  %v1170_v63 = vpop.f32.mrb[10].mxu0  ;;  %v1283_v32 = vpop.f32.mrb[10].mxu1  ;;  %v1481_v60 = vsel %vm1353_vm8, %v1163_v59, %v1417_v58  ;;  %v1483_v33 = vsel %vm1355_vm9, %v1276_v56, %v1419_v17 }
 0x439   : > { %vm1356_vm10 = vcmp.ge.f32.partialorder %v1167_v51, 0.0  ;;  %v1420_v16 = vmul.f32 0.1, %v1167_v51  ;;  %vm1358_vm11 = vcmp.ge.f32.partialorder %v1280_v18, 0.0  ;;  %v1477_v40 = vsel %vm1349_vm4, %v1159_v46, %v1413_v54  ;;  %v1172_v23 = vpop.f32.mrb[11].mxu0  ;;  %v1285_v30 = vpop.f32.mrb[11].mxu1 }
 0x43a   : > { %v1422_v47 = vmul.f32 0.1, %v1280_v18  ;;  %v1421_v42 = vmul.f32 0.1, %v1169_v48  ;;  %v1423_v29 = vmul.f32 0.1, %v1282_v21  ;;  %v1479_v43 = vsel %vm1351_vm5, %v1272_v22, %v1415_v57 }
 0x43b   : > { %v1171_v44 = vadd.f32 %v1170_v63, %v3572_v41  ;;  %v1284_v45 = vadd.f32 %v1283_v32, %v3574_v36  ;;  %v1541_v53 = vpack.c.bf16 %v1481_v60, %v1477_v40  ;;  %v1543_v25 = vpack.c.bf16 %v1483_v33, %v1479_v43 }
 0x43c   : > { %vm1357_vm12 = vcmp.ge.f32.partialorder %v1169_v48, 0.0  ;;  %vm1359_vm13 = vcmp.ge.f32.partialorder %v1282_v21, 0.0  ;;  %v1173_v55 = vadd.f32 %v1172_v23, %v3576_v52  ;;  %v1286_v31 = vadd.f32 %v1285_v30, %v3578_v28 }
 0x43d   : > { %vm1360_vm14 = vcmp.ge.f32.partialorder %v1171_v44, 0.0  ;;  %v1424_v46 = vmul.f32 0.1, %v1171_v44  ;;  %vm1362_vm15 = vcmp.ge.f32.partialorder %v1284_v45, 0.0  ;;  %v1426_v54 = vmul.f32 0.1, %v1284_v45  ;;  %1865 = vmatprep.mubr.bf16.mxu0 %v1541_v53  ;;  %1962 = vmatprep.mubr.bf16.mxu1 %v1543_v25 }
 0x43e   : > { %vm1361_vm0 = vcmp.ge.f32.partialorder %v1173_v55, 0.0  ;;  %v1425_v22 = vmul.f32 0.1, %v1173_v55  ;;  %vm1363_vm1 = vcmp.ge.f32.partialorder %v1286_v31, 0.0  ;;  %v1427_v35 = vmul.f32 0.1, %v1286_v31  ;;  %1866 = vmatmul.mubr.bf16.vlgmr.msra.gmra.mrb[36].mxu0 %v1540_v37  ;;  %1963 = vmatmul.mubr.bf16.vlgmr.msra.gmra.mrb[36].mxu1 %v1542_v27 }
 0x43f   : > { %v1176_v38 = vpop.f32.mrb[12].mxu0  ;;  %v1289_v57 = vpop.f32.mrb[12].mxu1  ;;  %v1485_v59 = vsel %vm1357_vm12, %v1169_v48, %v1421_v42  ;;  %v1487_v56 = vsel %vm1359_vm13, %v1282_v21, %v1423_v29  ;;  %v1488_v34 = vsel %vm1360_vm14, %v1171_v44, %v1424_v46  ;;  %v1490_v24 = vsel %vm1362_vm15, %v1284_v45, %v1426_v54 }
 0x440   : > { %v1177_v58 = vadd.f32 %v1176_v38, %v3572_v41  ;;  %v3607_v17 = vadd.f32 %v1289_v57, %v3574_v36  ;;  %v1178_v50 = vpop.f32.mrb[13].mxu0  ;;  %v1291_v49 = vpop.f32.mrb[13].mxu1  ;;  %v1489_v62 = vsel %vm1361_vm0, %v1173_v55, %v1425_v22  ;;  %v1491_v61 = vsel %vm1363_vm1, %v1286_v31, %v1427_v35 }
 0x441   : > { %v1179_v39 = vadd.f32 %v1178_v50, %v3576_v52  ;;  %v1292_v26 = vadd.f32 %v1291_v49, %v3578_v28  ;;  %v1180_v37 = vpop.f32.mrb[14].mxu0  ;;  %v1293_v27 = vpop.f32.mrb[14].mxu1  ;;  %v1545_v19 = vpack.c.bf16 %v1489_v62, %v1485_v59  ;;  %v1547_v20 = vpack.c.bf16 %v1491_v61, %v1487_v56 }
 0x442   : > { %v1484_v48 = vsel %vm1356_vm10, %v1167_v51, %v1420_v16  ;;  %v1486_v21 = vsel %vm1358_vm11, %v1280_v18, %v1422_v47  ;;  %v1181_v63 = vadd.f32 %v1180_v37, %v3572_v41  ;;  %v3616_v32 = vadd.f32 %v1293_v27, %v3574_v36  ;;  %v1182_v60 = vpop.f32.mrb[15].mxu0  ;;  %v1295_v33 = vpop.f32.mrb[15].mxu1 }
 0x443   : > { %1873 = vmatprep.mubr.bf16.mxu0 %v1545_v19  ;;  %1970 = vmatprep.mubr.bf16.mxu1 %v1547_v20  ;;  %v1544_v40 = vpack.c.bf16 %v1488_v34, %v1484_v48  ;;  %v1546_v42 = vpack.c.bf16 %v1490_v24, %v1486_v21  ;;  %v1428_v29 = vmul.f32 0.1, %v1177_v58  ;;  %v1429_v43 = vmul.f32 0.1, %v1179_v39 }
 0x444   : > { %v1183_v44 = vadd.f32 %v1182_v60, %v3576_v52  ;;  %v1296_v45 = vadd.f32 %v1295_v33, %v3578_v28  ;;  %vm1365_vm2 = vcmp.ge.f32.partialorder %v1179_v39, 0.0  ;;  %v1431_v51 = vmul.f32 0.1, %v1292_v26 }
 0x445   : > { %vm1368_vm3 = vcmp.ge.f32.partialorder %v1181_v63, 0.0  ;;  %v1432_v18 = vmul.f32 0.1, %v1181_v63  ;;  %vm1364_vm6 = vcmp.ge.f32.partialorder %v1177_v58, 0.0  ;;  %vm1367_vm7 = vcmp.ge.f32.partialorder %v1292_v26, 0.0 }
 0x446   : > { %v1186_v23 = vpop.f32.mrb[16].mxu0  ;;  %v1299_v30 = vpop.f32.mrb[16].mxu1  ;;  %1874 = vmatmul.mubr.bf16.gmra.mrb[40].mxu0 %v1544_v40  ;;  %1971 = vmatmul.mubr.bf16.gmra.mrb[40].mxu1 %v1546_v42  ;;  %vm1369_vm4 = vcmp.ge.f32.partialorder %v1183_v44, 0.0  ;;  %v1433_v16 = vmul.f32 0.1, %v1183_v44  ;;  %vm1371_vm5 = vcmp.ge.f32.partialorder %v1296_v45, 0.0  ;;  %v1493_v56 = vsel %vm1365_vm2, %v1179_v39, %v1429_v43 }
 0x447   : > { %v1435_v47 = vmul.f32 0.1, %v1296_v45  ;;  %v3621_v53 = vadd.f32 %v1186_v23, %v3572_v41  ;;  %v3624_v25 = vadd.f32 %v1299_v30, %v3574_v36  ;;  %v1188_v55 = vpop.f32.mrb[17].mxu0  ;;  %v1301_v31 = vpop.f32.mrb[17].mxu1  ;;  %vm1366_vm8 = vcmp.ge.f32.partialorder %v3607_v17, 0.0 }
 0x448   : > { %v1189_v46 = vadd.f32 %v1188_v55, %v3576_v52  ;;  %v3628_v54 = vadd.f32 %v1301_v31, %v3578_v28  ;;  %v1190_v22 = vpop.f32.mrb[18].mxu0  ;;  %v1303_v35 = vpop.f32.mrb[18].mxu1  ;;  %v1497_v38 = vsel %vm1369_vm4, %v1183_v44, %v1433_v16  ;;  %v1430_v59 = vmul.f32 0.1, %v3607_v17 }
 0x449   : > { %v1499_v57 = vsel %vm1371_vm5, %v1296_v45, %v1435_v47  ;;  %v1496_v34 = vsel %vm1368_vm3, %v1181_v63, %v1432_v18  ;;  %vm1370_vm9 = vcmp.ge.f32.partialorder %v3616_v32, 0.0  ;;  %v1434_v24 = vmul.f32 0.1, %v3616_v32  ;;  %v1192_v61 = vpop.f32.mrb[19].mxu0  ;;  %v1305_v37 = vpop.f32.mrb[19].mxu1 }
 0x44a   : > { %v1495_v50 = vsel %vm1367_vm7, %v1292_v26, %v1431_v51  ;;  %v1492_v49 = vsel %vm1364_vm6, %v1177_v58, %v1428_v29  ;;  %vm1372_vm10 = vcmp.ge.f32.partialorder %v3621_v53, 0.0  ;;  %v3640_v62 = vadd.f32 %v1303_v35, %v3574_v36 }
 0x44b   : > { %v1549_v27 = vpack.c.bf16 %v1497_v38, %v1493_v56  ;;  %v1551_v19 = vpack.c.bf16 %v1499_v57, %v1495_v50  ;;  %v1436_v39 = vmul.f32 0.1, %v3621_v53  ;;  %v1193_v20 = vadd.f32 %v1192_v61, %v3576_v52 }
 0x44c   : > { %v1306_v48 = vadd.f32 %v1305_v37, %v3578_v28  ;;  %v1548_v21 = vpack.c.bf16 %v1496_v34, %v1492_v49  ;;  %vm1374_vm11 = vcmp.ge.f32.partialorder %v3624_v25, 0.0  ;;  %v1438_v58 = vmul.f32 0.1, %v3624_v25 }
 0x44d   : > { %vm1373_vm12 = vcmp.ge.f32.partialorder %v1189_v46, 0.0  ;;  %v1191_v60 = vadd.f32 %v1190_v22, %v3572_v41  ;;  %1881 = vmatprep.mubr.bf16.mxu0 %v1549_v27  ;;  %1978 = vmatprep.mubr.bf16.mxu1 %v1551_v19  ;;  %v1437_v33 = vmul.f32 0.1, %v1189_v46  ;;  %vm1377_vm13 = vcmp.ge.f32.partialorder %v1193_v20, 0.0 }
 0x44e   : > { %v1196_v63 = vpop.f32.mrb[20].mxu0  ;;  %v1309_v26 = vpop.f32.mrb[20].mxu1  ;;  %v1441_v40 = vmul.f32 0.1, %v1193_v20  ;;  %1882 = vmatmul.mubr.bf16.gmra.mrb[44].mxu0 %v1548_v21  ;;  %v1494_v42 = vsel %vm1366_vm8, %v3607_v17, %v1430_v59  ;;  %v1443_v29 = vmul.f32 0.1, %v1306_v48  ;;  %v1498_v43 = vsel %vm1370_vm9, %v3616_v32, %v1434_v24 }
 0x44f   : > { %v3655_v44 = vadd.f32 %v1196_v63, %v3572_v41  ;;  %v3658_v45 = vadd.f32 %v1309_v26, %v3574_v36  ;;  %v1198_v23 = vpop.f32.mrb[21].mxu0  ;;  %v1311_v30 = vpop.f32.mrb[21].mxu1  ;;  %v1550_v51 = vpack.c.bf16 %v1498_v43, %v1494_v42  ;;  %vm1375_vm14 = vcmp.ge.f32.partialorder %v3628_v54, 0.0 }
 0x450   : > { %v3661_v18 = vadd.f32 %v1198_v23, %v3576_v52  ;;  %v3664_v16 = vadd.f32 %v1311_v30, %v3578_v28  ;;  %v1200_v17 = vpop.f32.mrb[22].mxu0  ;;  %v1313_v47 = vpop.f32.mrb[22].mxu1  ;;  %v1505_v55 = vsel %vm1377_vm13, %v1193_v20, %v1441_v40  ;;  %v1439_v32 = vmul.f32 0.1, %v3628_v54 }
 0x451   : > { %vm1376_vm15 = vcmp.ge.f32.partialorder %v1191_v60, 0.0  ;;  %vm1379_vm0 = vcmp.ge.f32.partialorder %v1306_v48, 0.0  ;;  %v1440_v31 = vmul.f32 0.1, %v1191_v60  ;;  %vm1378_vm1 = vcmp.ge.f32.partialorder %v3640_v62, 0.0  ;;  %1979 = vmatmul.mubr.bf16.gmra.mrb[44].mxu1 %v1550_v51  ;;  %v1202_v56 = vpop.f32.mrb[23].mxu0 }
 0x452   : > { %v1442_v22 = vmul.f32 0.1, %v3640_v62  ;;  %v1501_v35 = vsel %vm1373_vm12, %v1189_v46, %v1437_v33  ;;  %v3672_v38 = vmul.f32 0.1, %v3655_v44  ;;  %v3675_v57 = vadd.f32 %v1200_v17, %v3572_v41  ;;  %v1315_v34 = vpop.f32.mrb[23].mxu1 }
 0x453   : > { %v3678_v59 = vadd.f32 %v1313_v47, %v3574_v36  ;;  %v1553_v24 = vpack.c.bf16 %v1505_v55, %v1501_v35  ;;  %vm1380_vm2 = vcmp.ge.f32.partialorder %v3655_v44, 0.0  ;;  %v3682_v50 = vmul.f32 0.1, %v3658_v45 }
 0x454   : > { %v1203_v49 = vadd.f32 %v1202_v56, %v3576_v52  ;;  %v1316_v46 = vadd.f32 %v1315_v34, %v3578_v28  ;;  %v1507_v61 = vsel %vm1379_vm0, %v1306_v48, %v1443_v29  ;;  %vm1382_vm3 = vcmp.ge.f32.partialorder %v3658_v45, 0.0 }
 0x455   : > { %vm1381_vm4 = vcmp.ge.f32.partialorder %v3661_v18, 0.0  ;;  %v1445_v19 = vmul.f32 0.1, %v3661_v18  ;;  %vm1383_vm5 = vcmp.ge.f32.partialorder %v3664_v16, 0.0  ;;  %v1447_v20 = vmul.f32 0.1, %v3664_v16  ;;  %1889 = vmatprep.mubr.bf16.mxu0 %v1553_v24 }
 0x456   : > { %v1206_v37 = vpop.f32.mrb[24].mxu0  ;;  %v1319_v27 = vpop.f32.mrb[24].mxu1  ;;  %vm1384_vm6 = vcmp.ge.f32.partialorder %v3675_v57, 0.0  ;;  %v1448_v21 = vmul.f32 0.1, %v3675_v57  ;;  %v1503_v48 = vsel %vm1375_vm14, %v3628_v54, %v1439_v32  ;;  %v1500_v63 = vsel %vm1372_vm10, %v3621_v53, %v1436_v39 }
 0x457   : > { %v1555_v26 = vpack.c.bf16 %v1507_v61, %v1503_v48  ;;  %v1504_v33 = vsel %vm1376_vm15, %v1191_v60, %v1440_v31  ;;  %v1502_v40 = vsel %vm1374_vm11, %v3624_v25, %v1438_v58  ;;  %v1506_v42 = vsel %vm1378_vm1, %v3640_v62, %v1442_v22  ;;  %v1208_v29 = vpop.f32.mrb[25].mxu0  ;;  %v1321_v43 = vpop.f32.mrb[25].mxu1 }
 0x458   : > { %v1552_v23 = vpack.c.bf16 %v1504_v33, %v1500_v63  ;;  %v1554_v30 = vpack.c.bf16 %v1506_v42, %v1502_v40  ;;  %v3708_v54 = vadd.f32 %v1206_v37, %v3572_v41  ;;  %v3711_v53 = vadd.f32 %v1319_v27, %v3574_v36  ;;  %v1210_v39 = vpop.f32.mrb[26].mxu0  ;;  %v1323_v60 = vpop.f32.mrb[26].mxu1 }
 0x459   : > { %v1449_v51 = vmul.f32 0.1, %v1203_v49  ;;  %1986 = vmatprep.mubr.bf16.mxu1 %v1555_v26  ;;  %v3714_v25 = vadd.f32 %v1208_v29, %v3576_v52  ;;  %v3717_v58 = vadd.f32 %v1321_v43, %v3578_v28  ;;  %v3720_v62 = vadd.f32 %v1323_v60, %v3574_v36  ;;  %v1212_v17 = vpop.f32.mrb[27].mxu0  ;;  %v1325_v47 = vpop.f32.mrb[27].mxu1 }
 0x45a   : > { %v1450_v55 = vmul.f32 0.1, %v3678_v59  ;;  %vm1385_vm7 = vcmp.ge.f32.partialorder %v1203_v49, 0.0  ;;  %v1451_v32 = vmul.f32 0.1, %v1316_v46  ;;  %1890 = vmatmul.mubr.bf16.gmra.mrb[48].mxu0 %v1552_v23  ;;  %1987 = vmatmul.mubr.bf16.gmra.mrb[48].mxu1 %v1554_v30  ;;  %v3724_v31 = vadd.f32 %v1210_v39, %v3572_v41 }
 0x45b   : > { %vm1386_vm8 = vcmp.ge.f32.partialorder %v3678_v59, 0.0  ;;  %vm1387_vm9 = vcmp.ge.f32.partialorder %v1316_v46, 0.0  ;;  %v3728_v22 = vmul.f32 0.1, %v3708_v54  ;;  %v3731_v35 = vmul.f32 0.1, %v3711_v53 }
 0x45c   : > { %vm1388_vm10 = vcmp.ge.f32.partialorder %v3708_v54, 0.0  ;;  %vm1389_vm11 = vcmp.ge.f32.partialorder %v3714_v25, 0.0  ;;  %v1453_v56 = vmul.f32 0.1, %v3714_v25  ;;  %vm1391_vm12 = vcmp.ge.f32.partialorder %v3717_v58, 0.0 }
 0x45d   : > { %v1455_v34 = vmul.f32 0.1, %v3717_v58  ;;  %v1213_v24 = vadd.f32 %v1212_v17, %v3576_v52  ;;  %v1326_v61 = vadd.f32 %v1325_v47, %v3578_v28  ;;  %v1509_v37 = vsel %vm1381_vm4, %v3661_v18, %v1445_v19 }
 0x45e   : > { %v1513_v27 = vsel %vm1385_vm7, %v1203_v49, %v1449_v51  ;;  %v1216_v48 = vpop.f32.mrb[28].mxu0  ;;  %v1329_v63 = vpop.f32.mrb[28].mxu1  ;;  %vm1390_vm13 = vcmp.ge.f32.partialorder %v3711_v53, 0.0  ;;  %vm1392_vm14 = vcmp.ge.f32.partialorder %v3724_v31, 0.0  ;;  %v3747_v26 = vmul.f32 0.1, %v3724_v31 }
 0x45f   : > { %v1557_v33 = vpack.c.bf16 %v1513_v27, %v1509_v37  ;;  %v1515_v40 = vsel %vm1387_vm9, %v1316_v46, %v1451_v32  ;;  %v1218_v42 = vpop.f32.mrb[29].mxu0  ;;  %v1331_v29 = vpop.f32.mrb[29].mxu1  ;;  %v1458_v43 = vmul.f32 0.1, %v3720_v62  ;;  %v1457_v23 = vmul.f32 0.1, %v1213_v24 }
 0x460   : > { %v1511_v18 = vsel %vm1383_vm5, %v3664_v16, %v1447_v20  ;;  %v1508_v49 = vsel %vm1380_vm2, %v3655_v44, %v3672_v38  ;;  %v1512_v46 = vsel %vm1384_vm6, %v3675_v57, %v1448_v21  ;;  %v1510_v30 = vsel %vm1382_vm3, %v3658_v45, %v3682_v50  ;;  %v1220_v20 = vpop.f32.mrb[30].mxu0  ;;  %v1333_v39 = vpop.f32.mrb[30].mxu1 }
 0x461   : > { %1897 = vmatprep.mubr.bf16.mxu0 %v1557_v33  ;;  %v1559_v19 = vpack.c.bf16 %v1515_v40, %v1511_v18  ;;  %v1514_v16 = vsel %vm1386_vm8, %v3678_v59, %v1450_v55  ;;  %v1556_v60 = vpack.c.bf16 %v1512_v46, %v1508_v49  ;;  %v3769_v44 = vadd.f32 %v1216_v48, %v3572_v41  ;;  %v1222_v57 = vpop.f32.mrb[31].mxu0  ;;  %v1335_v21 = vpop.f32.mrb[31].mxu1 }
 0x462   : > { %v1558_v51 = vpack.c.bf16 %v1514_v16, %v1510_v30  ;;  %v3772_v38 = vadd.f32 %v1329_v63, %v3574_v36  ;;  %v3775_v17 = vadd.f32 %v1218_v42, %v3576_v52  ;;  %v3778_v45 = vadd.f32 %v1331_v29, %v3578_v28 }
 0x463   : > { %1994 = vmatprep.mubr.bf16.mxu1 %v1559_v19  ;;  %v3781_v59 = vadd.f32 %v1220_v20, %v3572_v41  ;;  %v3784_v50 = vadd.f32 %v1333_v39, %v3574_v36  ;;  %vm1394_vm15 = vcmp.ge.f32.partialorder %v3720_v62, 0.0  ;;  %vm1393_vm0 = vcmp.ge.f32.partialorder %v1213_v24, 0.0  ;;  %1898 = vmatmul.mubr.bf16.gmra.mrb[52].mxu0 %v1556_v60 }
 0x464   : > { %v1459_v47 = vmul.f32 0.1, %v1326_v61  ;;  %1995 = vmatmul.mubr.bf16.gmra.mrb[52].mxu1 %v1558_v51  ;;  %v3788_v55 = vmul.f32 0.1, %v3769_v44  ;;  %vm1395_vm1 = vcmp.ge.f32.partialorder %v1326_v61, 0.0  ;;  %vm1397_vm2 = vcmp.ge.f32.partialorder %v3775_v17, 0.0 }
 0x465   : > { %v3791_v32 = vmul.f32 0.1, %v3772_v38  ;;  %v1461_v37 = vmul.f32 0.1, %v3775_v17  ;;  %vm1396_vm3 = vcmp.ge.f32.partialorder %v3769_v44, 0.0  ;;  %vm1399_vm4 = vcmp.ge.f32.partialorder %v3778_v45, 0.0 }
 0x466   : > { %v1463_v27 = vmul.f32 0.1, %v3778_v45  ;;  %v3799_v48 = vmul.f32 0.1, %v3781_v59  ;;  %v3802_v63 = vmul.f32 0.1, %v3784_v50  ;;  %v1223_v33 = vadd.f32 %v1222_v57, %v3576_v52 }
 0x467   : > { %v1336_v40 = vadd.f32 %v1335_v21, %v3578_v28  ;;  %v1517_v42 = vsel %vm1389_vm11, %v3714_v25, %v1453_v56  ;;  %v1521_v29 = vsel %vm1393_vm0, %v1213_v24, %v1457_v23  ;;  %v1226_v18 = vpop.f32.mrb[32].mxu0  ;;  %v1339_v49 = vpop.f32.mrb[32].mxu1  ;;  %vm1398_vm5 = vcmp.ge.f32.partialorder %v3772_v38, 0.0 }
 0x468   : > { %vm1400_vm6 = vcmp.ge.f32.partialorder %v3781_v59, 0.0  ;;  %vm1402_vm7 = vcmp.ge.f32.partialorder %v3784_v50, 0.0  ;;  %v1561_v19 = vpack.c.bf16 %v1521_v29, %v1517_v42  ;;  %v1519_v46 = vsel %vm1391_vm12, %v3717_v58, %v1455_v34  ;;  %v1228_v56 = vpop.f32.mrb[33].mxu0  ;;  %v1341_v24 = vpop.f32.mrb[33].mxu1 }
 0x469   : > { %v1523_v30 = vsel %vm1395_vm1, %v1326_v61, %v1459_v47  ;;  %v1516_v25 = vsel %vm1388_vm10, %v3708_v54, %v3728_v22  ;;  %vm1401_vm8 = vcmp.ge.f32.partialorder %v1223_v33, 0.0  ;;  %v1465_v23 = vmul.f32 0.1, %v1223_v33  ;;  %v1230_v22 = vpop.f32.mrb[34].mxu0  ;;  %v1343_v61 = vpop.f32.mrb[34].mxu1 }
 0x46a   : > { %vm1403_vm9 = vcmp.ge.f32.partialorder %v1336_v40, 0.0  ;;  %v1467_v16 = vmul.f32 0.1, %v1336_v40  ;;  %1905 = vmatprep.mubr.bf16.mxu0 %v1561_v19  ;;  %v1563_v20 = vpack.c.bf16 %v1523_v30, %v1519_v46  ;;  %v1520_v58 = vsel %vm1392_vm14, %v3724_v31, %v3747_v26  ;;  %v1232_v21 = vpop.f32.mrb[35].mxu0  ;;  %v1345_v47 = vpop.f32.mrb[35].mxu1 }
 0x46b   : > { %v1518_v34 = vsel %vm1390_vm13, %v3711_v53, %v3731_v35  ;;  %v1522_v54 = vsel %vm1394_vm15, %v3720_v62, %v1458_v43  ;;  %v1560_v39 = vpack.c.bf16 %v1520_v58, %v1516_v25  ;;  %v1227_v51 = vadd.f32 %v1226_v18, %v3572_v41 }
 0x46c   : > { %v1562_v60 = vpack.c.bf16 %v1522_v54, %v1518_v34  ;;  %v1340_v57 = vadd.f32 %v1339_v49, %v3574_v36  ;;  %2002 = vmatprep.mubr.bf16.mxu1 %v1563_v20  ;;  %v1229_v31 = vadd.f32 %v1228_v56, %v3576_v52  ;;  %v1342_v26 = vadd.f32 %v1341_v24, %v3578_v28 }
 0x46d   : > { %v1231_v53 = vadd.f32 %v1230_v22, %v3572_v41  ;;  %v1344_v35 = vadd.f32 %v1343_v61, %v3574_v36  ;;  %1906 = vmatmul.mubr.bf16.gmra.mrb[56].mxu0 %v1560_v39  ;;  %vm1404_vm10 = vcmp.ge.f32.partialorder %v1227_v51, 0.0  ;;  %v1468_v62 = vmul.f32 0.1, %v1227_v51  ;;  %v3870_v22 = vld [vmem:[#allocation7 + $0xd] ss:$0 sm:$0xff] }
 0x46e   : > { %2003 = vmatmul.mubr.bf16.gmra.mrb[56].mxu1 %v1562_v60  ;;  %vm1406_vm11 = vcmp.ge.f32.partialorder %v1340_v57, 0.0  ;;  %v1470_v43 = vmul.f32 0.1, %v1340_v57  ;;  %vm1405_vm12 = vcmp.ge.f32.partialorder %v1229_v31, 0.0  ;;  %v1469_v42 = vmul.f32 0.1, %v1229_v31 }
 0x46f   : > { %vm1407_vm13 = vcmp.ge.f32.partialorder %v1342_v26, 0.0  ;;  %v1471_v29 = vmul.f32 0.1, %v1342_v26  ;;  %vm1408_vm14 = vcmp.ge.f32.partialorder %v1231_v53, 0.0  ;;  %v1472_v18 = vmul.f32 0.1, %v1231_v53 }
 0x470   : > { %vm1410_vm15 = vcmp.ge.f32.partialorder %v1344_v35, 0.0  ;;  %v1474_v49 = vmul.f32 0.1, %v1344_v35  ;;  %v1233_v19 = vadd.f32 %v1232_v21, %v3576_v52  ;;  %v1346_v41 = vadd.f32 %v1345_v47, %v3578_v28 }
 0x471   : > { %v1525_v36 = vsel %vm1397_vm2, %v3775_v17, %v1461_v37  ;;  %v1529_v46 = vsel %vm1401_vm8, %v1223_v33, %v1465_v23  ;;  %v1527_v25 = vsel %vm1399_vm4, %v3778_v45, %v1463_v27  ;;  %v1531_v56 = vsel %vm1403_vm9, %v1336_v40, %v1467_v16 }
 0x472   : > { %v1565_v30 = vpack.c.bf16 %v1529_v46, %v1525_v36  ;;  %v1524_v52 = vsel %vm1396_vm3, %v3769_v44, %v3788_v55  ;;  %vm1409_vm0 = vcmp.ge.f32.partialorder %v1233_v19, 0.0  ;;  %v1473_v28 = vmul.f32 0.1, %v1233_v19 }
 0x473   : > { %vm1411_vm1 = vcmp.ge.f32.partialorder %v1346_v41, 0.0  ;;  %v1475_v24 = vmul.f32 0.1, %v1346_v41  ;;  %v1567_v17 = vpack.c.bf16 %v1531_v56, %v1527_v25  ;;  %v1528_v37 = vsel %vm1400_vm6, %v3781_v59, %v3799_v48 }
 0x474   : > { %1913 = vmatprep.mubr.bf16.mxu0 %v1565_v30  ;;  %v1526_v45 = vsel %vm1398_vm5, %v3772_v38, %v3791_v32  ;;  %v1530_v44 = vsel %vm1402_vm7, %v3784_v50, %v3802_v63  ;;  %v1564_v55 = vpack.c.bf16 %v1528_v37, %v1524_v52  ;;  %v1533_v33 = vsel %vm1405_vm12, %v1229_v31, %v1469_v42 }
 0x475   : > { %v1566_v27 = vpack.c.bf16 %v1530_v44, %v1526_v45  ;;  %v1537_v40 = vsel %vm1409_vm0, %v1233_v19, %v1473_v28  ;;  %2010 = vmatprep.mubr.bf16.mxu1 %v1567_v17  ;;  %v1535_v16 = vsel %vm1407_vm13, %v1342_v26, %v1471_v29  ;;  %v1539_v59 = vsel %vm1411_vm1, %v1346_v41, %v1475_v24 }
 0x476   : > { %v1569_v23 = vpack.c.bf16 %v1537_v40, %v1533_v33  ;;  %1914 = vmatmul.mubr.bf16.gmra.mrb[60].mxu0 %v1564_v55  ;;  %v1571_v48 = vpack.c.bf16 %v1539_v59, %v1535_v16  ;;  %v1532_v38 = vsel %vm1404_vm10, %v1227_v51, %v1468_v62  ;;  %v1536_v32 = vsel %vm1408_vm14, %v1231_v53, %v1472_v18  ;;  %v3873_v62 = vld [vmem:[#allocation7 + $0xe] ss:$0 sm:$0xff] }
 0x477   : > { %2011 = vmatmul.mubr.bf16.gmra.mrb[60].mxu1 %v1566_v27  ;;  %v1568_v20 = vpack.c.bf16 %v1536_v32, %v1532_v38  ;;  %v1534_v50 = vsel %vm1406_vm11, %v1340_v57, %v1470_v43  ;;  %v1538_v63 = vsel %vm1410_vm15, %v1344_v35, %v1474_v49 }
 0x478   : > { %1921 = vmatprep.mubr.bf16.mxu0 %v1569_v23  ;;  %2018 = vmatprep.mubr.bf16.mxu1 %v1571_v48  ;;  %v1570_v58 = vpack.c.bf16 %v1538_v63, %v1534_v50 }
 0x47e   : > { %1922 = vmatmul.mubr.bf16.gmra.mrb[64].mxu0 %v1568_v20 }
 0x47f   : > { %2019 = vmatmul.mubr.bf16.gmra.mrb[64].mxu1 %v1570_v58 }
 0x511   : > { %v2328_v34 = vpop.f32.mrb[36].mxu0  ;;  %v2392_v54 = vpop.f32.mrb[36].mxu1 }
 0x512   : > { %v2329_v61 = vpop.f32.mrb[37].mxu0  ;;  %v2393_v39 = vpop.f32.mrb[37].mxu1 }
 0x513   : > { %v2330_v60 = vadd.f32 %v2329_v61, %v2328_v34  ;;  %v2394_v51 = vadd.f32 %v2393_v39, %v2392_v54  ;;  %v2331_v21 = vpop.f32.mrb[38].mxu0  ;;  %v2395_v47 = vpop.f32.mrb[38].mxu1 }
 0x514   : > { %v2332_v31 = vpop.f32.mrb[39].mxu0  ;;  %v2396_v26 = vpop.f32.mrb[39].mxu1 }
 0x515   : > { %v1868_v57 = vadd.f32 %v2330_v60, %v3870_v22  ;;  %v2333_v53 = vadd.f32 %v2332_v31, %v2331_v21  ;;  %v2397_v35 = vadd.f32 %v2396_v26, %v2395_v47 }
 0x517   : > { %v1965_v43 = vadd.f32 %v2394_v51, %v1868_v57  ;;  %v1871_v42 = vadd.f32 %v2333_v53, %v3870_v22 }
 0x519   : > { %v2032_v29 = vmul.f32 %v3873_v62, %v1965_v43  ;;  %v1968_v18 = vadd.f32 %v2397_v35, %v1871_v42  ;;  %v2334_v49 = vpop.f32.mrb[40].mxu0  ;;  %v2398_v19 = vpop.f32.mrb[40].mxu1 }
 0x51a   : > { %v2335_v41 = vpop.f32.mrb[41].mxu0  ;;  %v2399_v36 = vpop.f32.mrb[41].mxu1 }
 0x51b   : > { %v2048_v46 = vadd.f32 %v2032_v29, %v3244_v1  ;;  %v2033_v30 = vmul.f32 %v3873_v62, %v1968_v18  ;;  %v2336_v25 = vadd.f32 %v2335_v41, %v2334_v49  ;;  %v2400_v56 = vadd.f32 %v2399_v36, %v2398_v19  ;;  %v2337_v52 = vpop.f32.mrb[42].mxu0  ;;  %v2401_v28 = vpop.f32.mrb[42].mxu1 }
 0x51c   : > { %v2338_v24 = vpop.f32.mrb[43].mxu0  ;;  %v2402_v17 = vpop.f32.mrb[43].mxu1 }
 0x51d   : > { %2064 = vst [vmem:[%s3452_s12] sm:$0xff] %v2048_v46  ;;  %v2049_v37 = vadd.f32 %v2033_v30, %v3252_v3  ;;  %v1876_v45 = vadd.f32 %v2336_v25, %v3870_v22  ;;  %v2339_v44 = vadd.f32 %v2338_v24, %v2337_v52  ;;  %v2403_v55 = vadd.f32 %v2402_v17, %v2401_v28 }
 0x51f   : > { %2065 = vst [vmem:[%s3452_s12 + $0x8] sm:$0xff] %v2049_v37  ;;  %v1973_v27 = vadd.f32 %v2400_v56, %v1876_v45  ;;  %v1879_v1 = vadd.f32 %v2339_v44, %v3870_v22 }
 0x521   : > { %v2034_v33 = vmul.f32 %v3873_v62, %v1973_v27  ;;  %v1976_v40 = vadd.f32 %v2403_v55, %v1879_v1  ;;  %v2340_v23 = vpop.f32.mrb[44].mxu0 }
 0x522   : > { %v2341_v48 = vpop.f32.mrb[45].mxu0 }
 0x523   : > { %v2050_v16 = vadd.f32 %v2034_v33, %v3241_v0  ;;  %v2035_v59 = vmul.f32 %v3873_v62, %v1976_v40  ;;  %v2342_v38 = vadd.f32 %v2341_v48, %v2340_v23  ;;  %v2343_v3 = vpop.f32.mrb[46].mxu0 }
 0x524   : > { %v2344_v20 = vpop.f32.mrb[47].mxu0  ;;  %v2404_v50 = vpop.f32.mrb[44].mxu1 }
 0x525   : > { %2066 = vst [vmem:[%s3452_s12 + $0x10] sm:$0xff] %v2050_v16  ;;  %v2051_v32 = vadd.f32 %v2035_v59, %v3249_v2  ;;  %v1884_v63 = vadd.f32 %v2342_v38, %v3870_v22  ;;  %v2345_v58 = vadd.f32 %v2344_v20, %v2343_v3  ;;  %v2405_v34 = vpop.f32.mrb[45].mxu1 }
 0x526   : > { %v2406_v54 = vadd.f32 %v2405_v34, %v2404_v50  ;;  %v2407_v61 = vpop.f32.mrb[46].mxu1 }
 0x527   : > { %2067 = vst [vmem:[%s3452_s12 + $0x18] sm:$0xff] %v2051_v32  ;;  %v1887_v0 = vadd.f32 %v2345_v58, %v3870_v22  ;;  %v2408_v39 = vpop.f32.mrb[47].mxu1 }
 0x528   : > { %v1981_v60 = vadd.f32 %v2406_v54, %v1884_v63  ;;  %v2409_v51 = vadd.f32 %v2408_v39, %v2407_v61 }
 0x52a   : > { %v2036_v21 = vmul.f32 %v3873_v62, %v1981_v60  ;;  %v1984_v47 = vadd.f32 %v2409_v51, %v1887_v0 }
 0x52c   : > { %v2052_v2 = vadd.f32 %v2036_v21, %v3260_v5  ;;  %v2037_v31 = vmul.f32 %v3873_v62, %v1984_v47 }
 0x52d   : > { %v2346_v26 = vpop.f32.mrb[48].mxu0  ;;  %v2410_v57 = vpop.f32.mrb[48].mxu1 }
 0x52e   : > { %v2347_v53 = vpop.f32.mrb[49].mxu0  ;;  %v2411_v35 = vpop.f32.mrb[49].mxu1  ;;  %2068 = vst [vmem:[%s3452_s12 + $0x20] sm:$0xff] %v2052_v2  ;;  %v2053_v43 = vadd.f32 %v2037_v31, %v3257_v4 }
 0x52f   : > { %v2348_v42 = vadd.f32 %v2347_v53, %v2346_v26  ;;  %v2412_v29 = vadd.f32 %v2411_v35, %v2410_v57  ;;  %v2349_v18 = vpop.f32.mrb[50].mxu0  ;;  %v2413_v49 = vpop.f32.mrb[50].mxu1 }
 0x530   : > { %v2350_v19 = vpop.f32.mrb[51].mxu0  ;;  %v2414_v41 = vpop.f32.mrb[51].mxu1  ;;  %2069 = vst [vmem:[%s3452_s12 + $0x28] sm:$0xff] %v2053_v43 }
 0x531   : > { %v1892_v36 = vadd.f32 %v2348_v42, %v3870_v22  ;;  %v2351_v46 = vadd.f32 %v2350_v19, %v2349_v18  ;;  %v2415_v5 = vadd.f32 %v2414_v41, %v2413_v49 }
 0x533   : > { %v1989_v30 = vadd.f32 %v2412_v29, %v1892_v36  ;;  %v1895_v25 = vadd.f32 %v2351_v46, %v3870_v22 }
 0x535   : > { %v2038_v56 = vmul.f32 %v3873_v62, %v1989_v30  ;;  %v1992_v52 = vadd.f32 %v2415_v5, %v1895_v25 }
 0x536   : > { %v2352_v28 = vpop.f32.mrb[52].mxu0 }
 0x537   : > { %v2416_v4 = vpop.f32.mrb[52].mxu1  ;;  %v2054_v24 = vadd.f32 %v2038_v56, %v3268_v7  ;;  %v2039_v17 = vmul.f32 %v3873_v62, %v1992_v52  ;;  %v2353_v37 = vpop.f32.mrb[53].mxu0 }
 0x538   : > { %v2417_v45 = vpop.f32.mrb[53].mxu1  ;;  %v2354_v44 = vadd.f32 %v2353_v37, %v2352_v28  ;;  %v2355_v27 = vpop.f32.mrb[54].mxu0 }
 0x539   : > { %v2418_v55 = vadd.f32 %v2417_v45, %v2416_v4  ;;  %v2419_v1 = vpop.f32.mrb[54].mxu1  ;;  %2070 = vst [vmem:[%s3452_s12 + $0x30] sm:$0xff] %v2054_v24  ;;  %v2055_v33 = vadd.f32 %v2039_v17, %v3265_v6  ;;  %v2356_v40 = vpop.f32.mrb[55].mxu0 }
 0x53a   : > { %v2420_v23 = vpop.f32.mrb[55].mxu1  ;;  %v1900_v16 = vadd.f32 %v2354_v44, %v3870_v22  ;;  %v2357_v59 = vadd.f32 %v2356_v40, %v2355_v27 }
 0x53b   : > { %v2421_v48 = vadd.f32 %v2420_v23, %v2419_v1  ;;  %2071 = vst [vmem:[%s3452_s12 + $0x38] sm:$0xff] %v2055_v33 }
 0x53c   : > { %v1997_v7 = vadd.f32 %v2418_v55, %v1900_v16  ;;  %v1903_v38 = vadd.f32 %v2357_v59, %v3870_v22 }
 0x53e   : > { %v2040_v3 = vmul.f32 %v3873_v62, %v1997_v7  ;;  %v2000_v32 = vadd.f32 %v2421_v48, %v1903_v38 }
 0x540   : > { %v2358_v20 = vpop.f32.mrb[56].mxu0  ;;  %v2056_v63 = vadd.f32 %v2040_v3, %v3276_v9  ;;  %v2041_v6 = vmul.f32 %v3873_v62, %v2000_v32 }
 0x541   : > { %v2422_v50 = vpop.f32.mrb[56].mxu1  ;;  %v2359_v58 = vpop.f32.mrb[57].mxu0 }
 0x542   : > { %v2423_v34 = vpop.f32.mrb[57].mxu1  ;;  %v2360_v54 = vadd.f32 %v2359_v58, %v2358_v20  ;;  %v2361_v0 = vpop.f32.mrb[58].mxu0  ;;  %2072 = vst [vmem:[%s3452_s12 + $0x40] sm:$0xff] %v2056_v63  ;;  %v2057_v60 = vadd.f32 %v2041_v6, %v3273_v8 }
 0x543   : > { %v2424_v61 = vadd.f32 %v2423_v34, %v2422_v50  ;;  %v2425_v39 = vpop.f32.mrb[58].mxu1  ;;  %v2362_v51 = vpop.f32.mrb[59].mxu0 }
 0x544   : > { %v2426_v21 = vpop.f32.mrb[59].mxu1  ;;  %v1908_v47 = vadd.f32 %v2360_v54, %v3870_v22  ;;  %v2363_v2 = vadd.f32 %v2362_v51, %v2361_v0  ;;  %2073 = vst [vmem:[%s3452_s12 + $0x48] sm:$0xff] %v2057_v60 }
 0x545   : > { %v2427_v31 = vadd.f32 %v2426_v21, %v2425_v39 }
 0x546   : > { %v2005_v9 = vadd.f32 %v2424_v61, %v1908_v47  ;;  %v1911_v26 = vadd.f32 %v2363_v2, %v3870_v22 }
 0x548   : > { %v2042_v57 = vmul.f32 %v3873_v62, %v2005_v9  ;;  %v2008_v53 = vadd.f32 %v2427_v31, %v1911_v26 }
 0x549   : > { %v2364_v35 = vpop.f32.mrb[60].mxu0 }
 0x54a   : > { %v2428_v43 = vpop.f32.mrb[60].mxu1  ;;  %v2058_v42 = vadd.f32 %v2042_v57, %v3284_v11  ;;  %v2043_v8 = vmul.f32 %v3873_v62, %v2008_v53  ;;  %v2365_v29 = vpop.f32.mrb[61].mxu0 }
 0x54b   : > { %v2429_v18 = vpop.f32.mrb[61].mxu1  ;;  %v2366_v49 = vadd.f32 %v2365_v29, %v2364_v35  ;;  %v2367_v41 = vpop.f32.mrb[62].mxu0 }
 0x54c   : > { %v2430_v19 = vadd.f32 %v2429_v18, %v2428_v43  ;;  %v2431_v36 = vpop.f32.mrb[62].mxu1  ;;  %2074 = vst [vmem:[%s3452_s12 + $0x50] sm:$0xff] %v2058_v42  ;;  %v2059_v46 = vadd.f32 %v2043_v8, %v3281_v10  ;;  %v2368_v5 = vpop.f32.mrb[63].mxu0 }
 0x54d   : > { %v2432_v30 = vpop.f32.mrb[63].mxu1  ;;  %v1916_v25 = vadd.f32 %v2366_v49, %v3870_v22  ;;  %v2369_v56 = vadd.f32 %v2368_v5, %v2367_v41 }
 0x54e   : > { %v2433_v52 = vadd.f32 %v2432_v30, %v2431_v36  ;;  %2075 = vst [vmem:[%s3452_s12 + $0x58] sm:$0xff] %v2059_v46 }
 0x54f   : > { %v2013_v28 = vadd.f32 %v2430_v19, %v1916_v25  ;;  %v1919_v11 = vadd.f32 %v2369_v56, %v3870_v22 }
 0x551   : > { %v2044_v4 = vmul.f32 %v3873_v62, %v2013_v28  ;;  %v2016_v24 = vadd.f32 %v2433_v52, %v1919_v11  ;;  %v2370_v17 = vpop.f32.mrb[64].mxu0 }
 0x552   : > { %v2434_v37 = vpop.f32.mrb[64].mxu1  ;;  %v2371_v45 = vpop.f32.mrb[65].mxu0 }
 0x553   : > { %v2435_v44 = vpop.f32.mrb[65].mxu1  ;;  %v2060_v10 = vadd.f32 %v2044_v4, %v3292_v13  ;;  %v2045_v55 = vmul.f32 %v3873_v62, %v2016_v24  ;;  %v2372_v27 = vadd.f32 %v2371_v45, %v2370_v17  ;;  %v2373_v33 = vpop.f32.mrb[66].mxu0 }
 0x554   : > { %v2436_v1 = vadd.f32 %v2435_v44, %v2434_v37  ;;  %v2437_v40 = vpop.f32.mrb[66].mxu1  ;;  %v2374_v23 = vpop.f32.mrb[67].mxu0 }
 0x555   : > { %v2438_v16 = vpop.f32.mrb[67].mxu1  ;;  %2076 = vst [vmem:[%s3452_s12 + $0x60] sm:$0xff] %v2060_v10  ;;  %v2061_v59 = vadd.f32 %v2045_v55, %v3289_v12  ;;  %v1924_v48 = vadd.f32 %v2372_v27, %v3870_v22  ;;  %v2375_v7 = vadd.f32 %v2374_v23, %v2373_v33 }
 0x556   : > { %v2439_v38 = vadd.f32 %v2438_v16, %v2437_v40 }
 0x557   : > { %2077 = vst [vmem:[%s3452_s12 + $0x68] sm:$0xff] %v2061_v59  ;;  %v2021_v3 = vadd.f32 %v2436_v1, %v1924_v48  ;;  %v1927_v13 = vadd.f32 %v2375_v7, %v3870_v22 }
 0x559   : > { %v2046_v32 = vmul.f32 %v3873_v62, %v2021_v3  ;;  %v2024_v20 = vadd.f32 %v2439_v38, %v1927_v13 }
 0x55b   : > { %v2062_v50 = vadd.f32 %v2046_v32, %v3300_v15  ;;  %v2047_v63 = vmul.f32 %v3873_v62, %v2024_v20 }
 0x55d   : > { %2078 = vst [vmem:[%s3452_s12 + $0x70] sm:$0xff] %v2062_v50  ;;  %v2063_v6 = vadd.f32 %v2047_v63, %v3297_v14 }
 0x55f   : > { %2079 = vst [vmem:[%s3452_s12 + $0x78] sm:$0xff] %v2063_v6 }
 0x560 PF: > { %s4057_s21 = sld [smem:[#allocation18_spill]]  ;;  %s2088_s18 = smul.u32 %s2917_s24, %s2921_s25 }
 0x561   : > { %s2095_s30 = sshll.u32 %s3452_s12, 4  ;;  %s4058_s16 = sld [smem:[#allocation24_spill]]  ;;  %s3941_s30 = int_to_ptr.vmem [resolvable:$true] %s2095_s30 }
 0x562   : > { %s2303_s17 = sshll.u32 %s2088_s18, 11  ;;  %s3950_s2 = scalar_lea.sflag [#allocation6], %s298_s6 }
 0x563   : > { %s2803_s4 = scalar_lea.vmem %s3941_s30, 2048  ;;  %s2951_s24 = smov [#allocation12]  }
 0x564   : > { %p2804_p11 = scmp.ne.s32.totalorder %s3941_s30, %s2803_s4  ;;  %s2807_s25 = sshll.u32 %s2951_s24, 4  ;;  %s2808_s25 = int_to_ptr.vmem [resolvable:$false] %s2807_s25 }
 0x565   : > { %s2809_s8 = scalar_lea.vmem %s2808_s25, 4096  ;;  %p2810_p12 = scmp.lt.s32.totalorder %s3941_s30, %s2808_s25 }
 0x566   : > { %p4059_p0 = scmp.ne.s32.totalorder %s4057_s21, 0  ;;  %p2811_p2 = scmp.lt.s32.totalorder %s2809_s8, %s2803_s4 }
 0x567   : > { %s3946_s7 = scalar_lea.hbm %s4058_s16, %s2303_s17 }
 0x568   : > { %p2805_p5 = pnand %p2804_p11, %p4059_p0  ;;  %p2812_p6 = por %p2811_p2, %p2810_p12 }
 0x56a   : > { %p2806_p8 = pneg %p2805_p5 }
 0x56c   : > { %p2813_p10 = pnand %p2812_p6, %p2806_p8 }
 0x56e   : > { %2816 = shalt.err (!%p2813_p10)
}
 0x56f   : > { %s2817_s6 = scalar_lea.hbm %s3946_s7, 2048  ;;  %s2821_s10 = scalar_lea.hbm %s4058_s16, 4096 }
 0x570   : > { %p2818_p1 = scmp.ne.s32.totalorder %s3946_s7, %s2817_s6  ;;  %p2822_p7 = scmp.lt.u32.totalorder %s3946_s7, %s4058_s16 }
 0x571   : > { %p2823_p9 = scmp.lt.u32.totalorder %s2821_s10, %s2817_s6  ;;  %p2825_p11 = scmp.lt.u32.totalorder %s2817_s6, %s3946_s7 }
 0x572   : > { %p2819_p4 = pnand %p2818_p1, %p4059_p0 }
 0x573   : > { %p2824_p13 = por %p2823_p9, %p2822_p7 }
 0x574   : > { %p2820_p3 = pneg %p2819_p4 }
 0x575   : > { %p2826_p5 = por %p2825_p11, %p2824_p13 }
 0x577   : > { %p2827_p8 = pnand %p2826_p5, %p2820_p3 }
 0x579   : > { %2830 = shalt.err (!%p2827_p8)
}
 0x57a   : > { %s2952_s18 = smov 128   ;;  %s2953_s17 = smov 8  }
 0x57b   : > { %2474 = dma.vmem_to_hbm [thread:$0]  (%p4059_p0), %s3941_s30, 2048, %s3946_s7, %s3950_s2, %s2952_s18, %s2952_s18, %s2953_s17  }
 0x57c PF: > { %s4060_s14 = sld [smem:[#allocation17_spill]]  ;;  %s4061_s13 = sld [smem:[#allocation19_spill]] }
 0x57d   : > { %p2501_p12 = scmp.ge.s32.totalorder %s2933_s28, 2 }
 0x582   : > { %s2110_s4 = sand.u32 1, %s4060_s14   ;;  %p4062_p2 = scmp.ne.s32.totalorder %s4061_s13, 0 }
 0x583   : > { %s2111_s24 = scalar_lea.sflag [#allocation6], %s2110_s4 }
 0x584   : > { %p2491_p6 = pnand %p2501_p12, %p4062_p2 }
 0x586   : > { %2888 = dma.done.wait (!%p2491_p6), %s2111_s24, 2048  }
 0x587   : > { %2890 = vsyncadd (!%p2491_p6), %s2111_s24, 4294965248  ;;  %s23_s28 = sadd.s32 1, %s2933_s28   ;;  %s4063_s18 = smov %s2897_s19 }
 0x588   : > { %p20_p10 = scmp.ge.s32.totalorder %s23_s28, 6   ;;  %s4064_s19 = smov %s2901_s20 }
 0x589   : > { %s4065_s20 = smov %s3182_s9  ;;  %s4066_s21 = smov %s2909_s22 }
 0x58a   : > { %s4067_s22 = smov %s2913_s23  ;;  %s4068_s23 = smov %s3167_s29 }
 0x58b   : > { %s4069_s24 = smov %s2925_s26  ;;  %s4070_s25 = smov %s2929_s27 }
 0x58c   : > { %s4071_s26 = smov %s4074_s5  ;;  %s4072_s27 = smov %s4078_s3 }
 0x58d   :  { %22 = sbr.rel (!%p20_p10) target bundleno = 17 (0x11), region = 109 }
 0x594   :  { %2116 = vsyncpa [#allocation5], 1 }
 0x595   :  { %2118 = vsyncpa [#allocation5 + $0x1], 1 }
 0x596   :  { %2119 = vsyncpa [#allocation8], 1 }
 0x597   :  { %2120 = vsyncpa [#allocation11], 1 }
 0x598   :  { %2121 = vsyncpa [#allocation6], 1 }
 0x599   :  { %2123 = vsyncpa [#allocation6 + $0x1], 1 }

</bundles_post_ra>
